<compile_context>
chip_gen: v7x
topology: tpu7x:2x2x1
jax: 0.10.0
libtpu: 0.0.40
codegen_flags: <defaults>
</compile_context>

<pallas_src>
import functools
import math

import numpy as np
import jax
import jax.numpy as jnp
from jax import lax
from jax.experimental import pallas as pl
from jax.experimental.pallas import tpu as pltpu


def _round_up(v, m):
    return (v + m - 1) // m * m


def _fused_block_kernel(x_ref, w1_ref, b1_ref, w2_ref, b2_ref, m_ref,
                        o_ref, slab1_ref, h_ref, slab2_ref, *,
                        offsets, l1, l2, place_off):
    """One batch element: conv3x3+bias+ReLU -> conv3x3+bias+ReLU, all in VMEM.

    x_ref    : (1, Ci_p, Ltot)  flattened, zero-tail-padded input canvas
    w1_ref   : (Co_p, 9*Ci_p)   conv1 weights, 3x3 taps folded into contraction
    b1_ref   : (Co_p, 1)        f32
    w2_ref   : (Co_p, 9*Co_p)
    b2_ref   : (Co_p, 1)        f32
    m_ref    : (1, L1)          1.0 on valid conv1 output pixels of the canvas
    o_ref    : (1, Co_p, L2)    row-cropped output canvas (f32)
    slab1_ref: (9*Ci_p, L1)     VMEM scratch: tap-stacked input (im2col-in-VMEM)
    h_ref    : (Co_p, Ltot)     VMEM scratch: conv1 activation canvas + pad ring
    slab2_ref: (9*Co_p, L2)     VMEM scratch: tap-stacked conv1 activations
    """
    ci_p = x_ref.shape[1]
    co_p = o_ref.shape[1]
    ltot = h_ref.shape[1]

    # ---- conv1: stage 9 shifted copies once, then ONE K=9*Ci_p MXU matmul ---
    for t, off in enumerate(offsets):
        slab1_ref[t * ci_p:(t + 1) * ci_p, :] = x_ref[0, :, off:off + l1]
    acc1 = jnp.dot(w1_ref[...], slab1_ref[...],
                   preferred_element_type=jnp.float32)
    h = (jnp.maximum(acc1 + b1_ref[...], 0.0) * m_ref[...]).astype(h_ref.dtype)

    # ---- stage conv1 output into its canvas (zero pad ring around it) -------
    # Only the small invariant ring is (re)zeroed each step - NOT the full
    # scratch - and it is intentionally not guarded by program_id==0 so it
    # stays correct if the "parallel" batch axis is split across TensorCores
    # (scratch is per-core).
    if place_off:
        h_ref[:, :place_off] = jnp.zeros((co_p, place_off), h_ref.dtype)
    tail = ltot - (place_off + l1)
    if tail:
        h_ref[:, place_off + l1:] = jnp.zeros((co_p, tail), h_ref.dtype)
    h_ref[:, place_off:place_off + l1] = h

    # ---- conv2: same tap-stacked trick over the VMEM-resident intermediate --
    for t, off in enumerate(offsets):
        slab2_ref[t * co_p:(t + 1) * co_p, :] = h_ref[:, off:off + l2]
    acc2 = jnp.dot(w2_ref[...], slab2_ref[...],
                   preferred_element_type=jnp.float32)
    o_ref[0] = jnp.maximum(acc2 + b2_ref[...], 0.0).astype(o_ref.dtype)


def unet_conv_block(x, w1, b1, w2, b2, padding=False, mxu_dtype=jnp.float32):
    """UNetConvBlock forward (batch_norm=False path).

    x : (N, Ci, H, W) float32 (NCHW, as in PyTorch)
    w1: (Co, Ci, 3, 3)  b1: (Co,)   -- torch Conv2d layouts
    w2: (Co, Co, 3, 3)  b2: (Co,)
    mxu_dtype: jnp.float32 (exact parity) or jnp.bfloat16 (fast MXU feed,
               f32 accumulation kept).
    Returns (N, Co, Hout, Wout) float32 matching nn.Conv2d semantics.
    """
    n, ci, h, w = x.shape
    co = w1.shape[0]
    p = 1 if padding else 0

    # Channel padding granule: 8 sublanes for f32, 16 for bf16 so that the
    # per-tap row blocks of the slabs stay packed-tile aligned.
    gran = 8 * (4 // jnp.dtype(mxu_dtype).itemsize)
    ci_p = _round_up(max(ci, gran), gran)
    co_p = _round_up(max(co, gran), gran)

    # Spatially padded canvas, flattened row-major: tap (kh, kw) becomes a
    # flat shift of kh*wp + kw; wrap-around columns/rows are masked or cropped.
    hp, wp = h + 2 * p, w + 2 * p
    lcan = hp * wp
    c1h, c1w = hp - 2, wp - 2                          # conv1 output extent
    out_h, out_w = c1h + 2 * p - 2, c1w + 2 * p - 2    # block output extent

    l1 = _round_up(lcan, 128)             # lane-dense conv1 output width
    l2 = _round_up(out_h * wp, 128)       # lane-dense, row-cropped block output
    max_shift = 2 * wp + 2
    place_off = p * (wp + 1)              # realizes conv2's zero-pad ring
    ltot = _round_up(l1 + max_shift, 128)

    # Input canvas: spatial pad, flatten, zero-pad the tail so out-of-image
    # taps read zeros; cast to the MXU feed dtype.
    xp = jnp.pad(x, ((0, 0), (0, ci_p - ci), (p, p), (p, p)))
    xp = xp.reshape(n, ci_p, lcan)
    xp = jnp.pad(xp, ((0, 0), (0, 0), (0, ltot - lcan))).astype(mxu_dtype)

    # Weights with the 9 taps folded into the contraction dim:
    #   Wr[co, (kh*3+kw)*Cin_p + cin] = W[co, cin, kh, kw]
    w1p = jnp.pad(w1, ((0, co_p - co), (0, ci_p - ci), (0, 0), (0, 0)))
    w2p = jnp.pad(w2, ((0, co_p - co), (0, co_p - co), (0, 0), (0, 0)))
    w1r = jnp.transpose(w1p, (0, 2, 3, 1)).reshape(co_p, 9 * ci_p).astype(mxu_dtype)
    w2r = jnp.transpose(w2p, (0, 2, 3, 1)).reshape(co_p, 9 * co_p).astype(mxu_dtype)
    b1p = jnp.pad(b1, (0, co_p - co)).reshape(co_p, 1).astype(jnp.float32)
    b2p = jnp.pad(b2, (0, co_p - co)).reshape(co_p, 1).astype(jnp.float32)

    # Static validity mask of conv1 outputs over the lane-padded canvas.
    q = np.arange(l1)
    mask = (((q % wp) < c1w) & ((q // wp) < c1h)).astype(np.float32)
    mask = jnp.asarray(mask.reshape(1, l1))

    offsets = tuple(kh * wp + kw for kh in range(3) for kw in range(3))
    kernel = functools.partial(_fused_block_kernel, offsets=offsets,
                               l1=l1, l2=l2, place_off=place_off)

    def call(invariant_mode):
        def inv_spec(shape):
            idx_map = lambda i, _nd=len(shape): (0,) * _nd
            if invariant_mode is None:
                return pl.BlockSpec(shape, idx_map)
            return pl.BlockSpec(shape, idx_map, pipeline_mode=invariant_mode)

        return pl.pallas_call(
            kernel,
            out_shape=jax.ShapeDtypeStruct((n, co_p, l2), jnp.float32),
            grid=(n,),
            in_specs=[
                pl.BlockSpec((1, ci_p, ltot), lambda i: (i, 0, 0)),
                inv_spec((co_p, 9 * ci_p)),
                inv_spec((co_p, 1)),
                inv_spec((co_p, 9 * co_p)),
                inv_spec((co_p, 1)),
                inv_spec((1, l1)),
            ],
            out_specs=pl.BlockSpec((1, co_p, l2), lambda i: (i, 0, 0)),
            scratch_shapes=[pltpu.VMEM((9 * ci_p, l1), mxu_dtype),
                            pltpu.VMEM((co_p, ltot), mxu_dtype),
                            pltpu.VMEM((9 * co_p, l2), mxu_dtype)],
            compiler_params=pltpu.CompilerParams(
                dimension_semantics=("parallel",)),
        )(xp, w1r, b1p, w2r, b2p, mask)

    try:
        # Grid-invariant operands: single-buffer them (double-buffering data
        # whose index_map never changes only wastes VMEM at UNet depths).
        y = call(pl.Buffered(1))
    except Exception:
        y = call(None)   # stricter pipeliner: fall back to default buffering

    # Crop valid channels / columns (rows were already cropped in-kernel).
    y = y[:, :co, :out_h * wp].reshape(n, co, out_h, wp)[:, :, :, :out_w]
    return y


# ---------------------------------------------------------------------------
# Pure-JAX reference (matches the PyTorch module's forward, batch_norm=False)
# ---------------------------------------------------------------------------

def unet_conv_block_ref(x, w1, b1, w2, b2, padding=False):
    p = 1 if padding else 0
    dn = ("NCHW", "OIHW", "NCHW")
    y = lax.conv_general_dilated(x, w1, (1, 1), [(p, p), (p, p)],
                                 dimension_numbers=dn)
    y = jnp.maximum(y + b1[None, :, None, None], 0.0)
    y = lax.conv_general_dilated(y, w2, (1, 1), [(p, p), (p, p)],
                                 dimension_numbers=dn)
    return jnp.maximum(y + b2[None, :, None, None], 0.0)


# ---------------------------------------------------------------------------

if __name__ == "__main__":
    key = jax.random.PRNGKey(0)
    kx, k1, k2, k3, k4 = jax.random.split(key, 5)

    N, C_IN, H, W, C_OUT = 2, 4, 16, 16, 8
    x = jax.random.normal(kx, (N, C_IN, H, W), jnp.float32)

    bnd1 = 1.0 / math.sqrt(C_IN * 9)
    bnd2 = 1.0 / math.sqrt(C_OUT * 9)
    w1 = jax.random.uniform(k1, (C_OUT, C_IN, 3, 3), jnp.float32, -bnd1, bnd1)
    b1 = jax.random.uniform(k2, (C_OUT,), jnp.float32, -bnd1, bnd1)
    w2 = jax.random.uniform(k3, (C_OUT, C_OUT, 3, 3), jnp.float32, -bnd2, bnd2)
    b2 = jax.random.uniform(k4, (C_OUT,), jnp.float32, -bnd2, bnd2)

    for padding in (False, True):
        ref = unet_conv_block_ref(x, w1, b1, w2, b2, padding=padding)
        expect = (N, C_OUT, H, W) if padding else (N, C_OUT, H - 4, W - 4)

        # Exact-parity path (f32 MXU feed, module semantics).
        out = jax.block_until_ready(
            unet_conv_block(x, w1, b1, w2, b2, padding=padding,
                            mxu_dtype=jnp.float32))
        assert out.shape == expect, (out.shape, expect)
        err = float(jnp.max(jnp.abs(out - ref)))
        assert jnp.allclose(out, ref, atol=1e-4, rtol=1e-4), ("f32", padding, err)

        # Fast path: bf16 MXU feed, f32 accumulation (relaxed tolerance).
        out_bf = jax.block_until_ready(
            unet_conv_block(x, w1, b1, w2, b2, padding=padding,
                            mxu_dtype=jnp.bfloat16))
        assert out_bf.shape == expect, (out_bf.shape, expect)
        err_bf = float(jnp.max(jnp.abs(out_bf - ref)))
        assert jnp.allclose(out_bf, ref, atol=5e-2, rtol=5e-2), \
            ("bf16", padding, err_bf)

    print("KERNEL_OK")
</pallas_src>

<mosaic_0001>
module attributes {stable_mosaic.version = 11 : i64} {
  func.func @_fused_block_kernel(%arg0: i32, %arg1: memref<1x8x384xf32, #tpu.memory_space<vmem>>, %arg2: memref<8x72xf32, #tpu.memory_space<vmem>>, %arg3: memref<8x1xf32, #tpu.memory_space<vmem>>, %arg4: memref<8x72xf32, #tpu.memory_space<vmem>>, %arg5: memref<8x1xf32, #tpu.memory_space<vmem>>, %arg6: memref<1x256xf32, #tpu.memory_space<vmem>>, %arg7: memref<1x8x256xf32, #tpu.memory_space<vmem>>, %arg8: memref<72x256xf32, #tpu.memory_space<vmem>>, %arg9: memref<8x384xf32, #tpu.memory_space<vmem>>, %arg10: memref<72x256xf32, #tpu.memory_space<vmem>>) attributes {dimension_semantics = [#tpu.dimension_semantics<parallel>], iteration_bounds = array<i64: 2>, scalar_prefetch = 0 : i64, scratch_operands = 3 : i64, tpu.core_type = #tpu.core_type<tc>, window_params = [{transform_indices = @transform_0, window_bounds = array<i64: 1, 8, 384>}, {pipeline_mode = #tpu.pipeline_mode<synchronous>, transform_indices = @transform_1, window_bounds = array<i64: 8, 72>}, {pipeline_mode = #tpu.pipeline_mode<synchronous>, transform_indices = @transform_2, window_bounds = array<i64: 8, 1>}, {pipeline_mode = #tpu.pipeline_mode<synchronous>, transform_indices = @transform_3, window_bounds = array<i64: 8, 72>}, {pipeline_mode = #tpu.pipeline_mode<synchronous>, transform_indices = @transform_4, window_bounds = array<i64: 8, 1>}, {pipeline_mode = #tpu.pipeline_mode<synchronous>, transform_indices = @transform_5, window_bounds = array<i64: 1, 256>}, {transform_indices = @transform_6, window_bounds = array<i64: 1, 8, 256>}]} {
    %c0 = arith.constant 0 : index
    %c0_0 = arith.constant 0 : index
    %c0_1 = arith.constant 0 : index
    %0 = vector.load %arg1[%c0, %c0_0, %c0_1] : memref<1x8x384xf32, #tpu.memory_space<vmem>>, vector<1x8x256xf32>
    %1 = vector.shape_cast %0 : vector<1x8x256xf32> to vector<8x256xf32>
    %c0_2 = arith.constant 0 : index
    %c0_3 = arith.constant 0 : index
    %2 = vector.load %arg8[%c0_2, %c0_3] : memref<72x256xf32, #tpu.memory_space<vmem>>, vector<8x256xf32>
    tpu.vector_store %arg8[%c0_2, %c0_3], %1 {strides = array<i32>} : memref<72x256xf32, #tpu.memory_space<vmem>>, vector<8x256xf32>,
    %c0_4 = arith.constant 0 : index
    %c0_5 = arith.constant 0 : index
    %c1 = arith.constant 1 : index
    %3 = vector.load %arg1[%c0_4, %c0_5, %c1] : memref<1x8x384xf32, #tpu.memory_space<vmem>>, vector<1x8x256xf32>
    %4 = vector.shape_cast %3 : vector<1x8x256xf32> to vector<8x256xf32>
    %c8 = arith.constant 8 : index
    %c0_6 = arith.constant 0 : index
    %5 = vector.load %arg8[%c8, %c0_6] : memref<72x256xf32, #tpu.memory_space<vmem>>, vector<8x256xf32>
    tpu.vector_store %arg8[%c8, %c0_6], %4 {strides = array<i32>} : memref<72x256xf32, #tpu.memory_space<vmem>>, vector<8x256xf32>,
    %c0_7 = arith.constant 0 : index
    %c0_8 = arith.constant 0 : index
    %c2 = arith.constant 2 : index
    %6 = vector.load %arg1[%c0_7, %c0_8, %c2] : memref<1x8x384xf32, #tpu.memory_space<vmem>>, vector<1x8x256xf32>
    %7 = vector.shape_cast %6 : vector<1x8x256xf32> to vector<8x256xf32>
    %c16 = arith.constant 16 : index
    %c0_9 = arith.constant 0 : index
    %8 = vector.load %arg8[%c16, %c0_9] : memref<72x256xf32, #tpu.memory_space<vmem>>, vector<8x256xf32>
    tpu.vector_store %arg8[%c16, %c0_9], %7 {strides = array<i32>} : memref<72x256xf32, #tpu.memory_space<vmem>>, vector<8x256xf32>,
    %c0_10 = arith.constant 0 : index
    %c0_11 = arith.constant 0 : index
    %c16_12 = arith.constant 16 : index
    %9 = vector.load %arg1[%c0_10, %c0_11, %c16_12] : memref<1x8x384xf32, #tpu.memory_space<vmem>>, vector<1x8x256xf32>
    %10 = vector.shape_cast %9 : vector<1x8x256xf32> to vector<8x256xf32>
    %c24 = arith.constant 24 : index
    %c0_13 = arith.constant 0 : index
    %11 = vector.load %arg8[%c24, %c0_13] : memref<72x256xf32, #tpu.memory_space<vmem>>, vector<8x256xf32>
    tpu.vector_store %arg8[%c24, %c0_13], %10 {strides = array<i32>} : memref<72x256xf32, #tpu.memory_space<vmem>>, vector<8x256xf32>,
    %c0_14 = arith.constant 0 : index
    %c0_15 = arith.constant 0 : index
    %c17 = arith.constant 17 : index
    %12 = vector.load %arg1[%c0_14, %c0_15, %c17] : memref<1x8x384xf32, #tpu.memory_space<vmem>>, vector<1x8x256xf32>
    %13 = vector.shape_cast %12 : vector<1x8x256xf32> to vector<8x256xf32>
    %c32 = arith.constant 32 : index
    %c0_16 = arith.constant 0 : index
    %14 = vector.load %arg8[%c32, %c0_16] : memref<72x256xf32, #tpu.memory_space<vmem>>, vector<8x256xf32>
    tpu.vector_store %arg8[%c32, %c0_16], %13 {strides = array<i32>} : memref<72x256xf32, #tpu.memory_space<vmem>>, vector<8x256xf32>,
    %c0_17 = arith.constant 0 : index
    %c0_18 = arith.constant 0 : index
    %c18 = arith.constant 18 : index
    %15 = vector.load %arg1[%c0_17, %c0_18, %c18] : memref<1x8x384xf32, #tpu.memory_space<vmem>>, vector<1x8x256xf32>
    %16 = vector.shape_cast %15 : vector<1x8x256xf32> to vector<8x256xf32>
    %c40 = arith.constant 40 : index
    %c0_19 = arith.constant 0 : index
    %17 = vector.load %arg8[%c40, %c0_19] : memref<72x256xf32, #tpu.memory_space<vmem>>, vector<8x256xf32>
    tpu.vector_store %arg8[%c40, %c0_19], %16 {strides = array<i32>} : memref<72x256xf32, #tpu.memory_space<vmem>>, vector<8x256xf32>,
    %c0_20 = arith.constant 0 : index
    %c0_21 = arith.constant 0 : index
    %c32_22 = arith.constant 32 : index
    %18 = vector.load %arg1[%c0_20, %c0_21, %c32_22] : memref<1x8x384xf32, #tpu.memory_space<vmem>>, vector<1x8x256xf32>
    %19 = vector.shape_cast %18 : vector<1x8x256xf32> to vector<8x256xf32>
    %c48 = arith.constant 48 : index
    %c0_23 = arith.constant 0 : index
    %20 = vector.load %arg8[%c48, %c0_23] : memref<72x256xf32, #tpu.memory_space<vmem>>, vector<8x256xf32>
    tpu.vector_store %arg8[%c48, %c0_23], %19 {strides = array<i32>} : memref<72x256xf32, #tpu.memory_space<vmem>>, vector<8x256xf32>,
    %c0_24 = arith.constant 0 : index
    %c0_25 = arith.constant 0 : index
    %c33 = arith.constant 33 : index
    %21 = vector.load %arg1[%c0_24, %c0_25, %c33] : memref<1x8x384xf32, #tpu.memory_space<vmem>>, vector<1x8x256xf32>
    %22 = vector.shape_cast %21 : vector<1x8x256xf32> to vector<8x256xf32>
    %c56 = arith.constant 56 : index
    %c0_26 = arith.constant 0 : index
    %23 = vector.load %arg8[%c56, %c0_26] : memref<72x256xf32, #tpu.memory_space<vmem>>, vector<8x256xf32>
    tpu.vector_store %arg8[%c56, %c0_26], %22 {strides = array<i32>} : memref<72x256xf32, #tpu.memory_space<vmem>>, vector<8x256xf32>,
    %c0_27 = arith.constant 0 : index
    %c0_28 = arith.constant 0 : index
    %c34 = arith.constant 34 : index
    %24 = vector.load %arg1[%c0_27, %c0_28, %c34] : memref<1x8x384xf32, #tpu.memory_space<vmem>>, vector<1x8x256xf32>
    %25 = vector.shape_cast %24 : vector<1x8x256xf32> to vector<8x256xf32>
    %c64 = arith.constant 64 : index
    %c0_29 = arith.constant 0 : index
    %26 = vector.load %arg8[%c64, %c0_29] : memref<72x256xf32, #tpu.memory_space<vmem>>, vector<8x256xf32>
    tpu.vector_store %arg8[%c64, %c0_29], %25 {strides = array<i32>} : memref<72x256xf32, #tpu.memory_space<vmem>>, vector<8x256xf32>,
    %c0_30 = arith.constant 0 : index
    %c0_31 = arith.constant 0 : index
    %27 = vector.load %arg2[%c0_30, %c0_31] : memref<8x72xf32, #tpu.memory_space<vmem>>, vector<8x72xf32>
    %c0_32 = arith.constant 0 : index
    %c0_33 = arith.constant 0 : index
    %28 = vector.load %arg8[%c0_32, %c0_33] : memref<72x256xf32, #tpu.memory_space<vmem>>, vector<72x256xf32>
    %cst = arith.constant dense<0.000000e+00> : vector<8x256xf32>
    %29 = tpu.matmul %27, %28, %cst {dimension_numbers = #tpu.dot_dimension_numbers<[1], [0], [0], [1], [0, 0, 1, 1], [], []>} : vector<8x72xf32>, vector<72x256xf32>, vector<8x256xf32> -> vector<8x256xf32>
    %c0_34 = arith.constant 0 : index
    %c0_35 = arith.constant 0 : index
    %30 = vector.load %arg3[%c0_34, %c0_35] : memref<8x1xf32, #tpu.memory_space<vmem>>, vector<8x1xf32>
    %31 = vector.broadcast %30 : vector<8x1xf32> to vector<8x256xf32>
    %32 = arith.addf %29, %31 : vector<8x256xf32>
    %cst_36 = arith.constant 0.000000e+00 : f32
    %33 = vector.broadcast %cst_36 : f32 to vector<8x256xf32>
    %34 = arith.maximumf %32, %33 : vector<8x256xf32>
    %c0_37 = arith.constant 0 : index
    %c0_38 = arith.constant 0 : index
    %35 = vector.load %arg6[%c0_37, %c0_38] : memref<1x256xf32, #tpu.memory_space<vmem>>, vector<1x256xf32>
    %36 = vector.broadcast %35 : vector<1x256xf32> to vector<8x256xf32>
    %37 = arith.mulf %34, %36 : vector<8x256xf32>
    %cst_39 = arith.constant 0.000000e+00 : f32
    %38 = vector.broadcast %cst_39 : f32 to vector<8x128xf32>
    %c0_40 = arith.constant 0 : index
    %c256 = arith.constant 256 : index
    %39 = vector.load %arg9[%c0_40, %c256] : memref<8x384xf32, #tpu.memory_space<vmem>>, vector<8x128xf32>
    tpu.vector_store %arg9[%c0_40, %c256], %38 {strides = array<i32>} : memref<8x384xf32, #tpu.memory_space<vmem>>, vector<8x128xf32>,
    %c0_41 = arith.constant 0 : index
    %c0_42 = arith.constant 0 : index
    %40 = vector.load %arg9[%c0_41, %c0_42] : memref<8x384xf32, #tpu.memory_space<vmem>>, vector<8x256xf32>
    tpu.vector_store %arg9[%c0_41, %c0_42], %37 {strides = array<i32>} : memref<8x384xf32, #tpu.memory_space<vmem>>, vector<8x256xf32>,
    %c0_43 = arith.constant 0 : index
    %c0_44 = arith.constant 0 : index
    %41 = vector.load %arg9[%c0_43, %c0_44] : memref<8x384xf32, #tpu.memory_space<vmem>>, vector<8x256xf32>
    %c0_45 = arith.constant 0 : index
    %c0_46 = arith.constant 0 : index
    %42 = vector.load %arg10[%c0_45, %c0_46] : memref<72x256xf32, #tpu.memory_space<vmem>>, vector<8x256xf32>
    tpu.vector_store %arg10[%c0_45, %c0_46], %41 {strides = array<i32>} : memref<72x256xf32, #tpu.memory_space<vmem>>, vector<8x256xf32>,
    %c0_47 = arith.constant 0 : index
    %c1_48 = arith.constant 1 : index
    %43 = vector.load %arg9[%c0_47, %c1_48] : memref<8x384xf32, #tpu.memory_space<vmem>>, vector<8x256xf32>
    %c8_49 = arith.constant 8 : index
    %c0_50 = arith.constant 0 : index
    %44 = vector.load %arg10[%c8_49, %c0_50] : memref<72x256xf32, #tpu.memory_space<vmem>>, vector<8x256xf32>
    tpu.vector_store %arg10[%c8_49, %c0_50], %43 {strides = array<i32>} : memref<72x256xf32, #tpu.memory_space<vmem>>, vector<8x256xf32>,
    %c0_51 = arith.constant 0 : index
    %c2_52 = arith.constant 2 : index
    %45 = vector.load %arg9[%c0_51, %c2_52] : memref<8x384xf32, #tpu.memory_space<vmem>>, vector<8x256xf32>
    %c16_53 = arith.constant 16 : index
    %c0_54 = arith.constant 0 : index
    %46 = vector.load %arg10[%c16_53, %c0_54] : memref<72x256xf32, #tpu.memory_space<vmem>>, vector<8x256xf32>
    tpu.vector_store %arg10[%c16_53, %c0_54], %45 {strides = array<i32>} : memref<72x256xf32, #tpu.memory_space<vmem>>, vector<8x256xf32>,
    %c0_55 = arith.constant 0 : index
    %c16_56 = arith.constant 16 : index
    %47 = vector.load %arg9[%c0_55, %c16_56] : memref<8x384xf32, #tpu.memory_space<vmem>>, vector<8x256xf32>
    %c24_57 = arith.constant 24 : index
    %c0_58 = arith.constant 0 : index
    %48 = vector.load %arg10[%c24_57, %c0_58] : memref<72x256xf32, #tpu.memory_space<vmem>>, vector<8x256xf32>
    tpu.vector_store %arg10[%c24_57, %c0_58], %47 {strides = array<i32>} : memref<72x256xf32, #tpu.memory_space<vmem>>, vector<8x256xf32>,
    %c0_59 = arith.constant 0 : index
    %c17_60 = arith.constant 17 : index
    %49 = vector.load %arg9[%c0_59, %c17_60] : memref<8x384xf32, #tpu.memory_space<vmem>>, vector<8x256xf32>
    %c32_61 = arith.constant 32 : index
    %c0_62 = arith.constant 0 : index
    %50 = vector.load %arg10[%c32_61, %c0_62] : memref<72x256xf32, #tpu.memory_space<vmem>>, vector<8x256xf32>
    tpu.vector_store %arg10[%c32_61, %c0_62], %49 {strides = array<i32>} : memref<72x256xf32, #tpu.memory_space<vmem>>, vector<8x256xf32>,
    %c0_63 = arith.constant 0 : index
    %c18_64 = arith.constant 18 : index
    %51 = vector.load %arg9[%c0_63, %c18_64] : memref<8x384xf32, #tpu.memory_space<vmem>>, vector<8x256xf32>
    %c40_65 = arith.constant 40 : index
    %c0_66 = arith.constant 0 : index
    %52 = vector.load %arg10[%c40_65, %c0_66] : memref<72x256xf32, #tpu.memory_space<vmem>>, vector<8x256xf32>
    tpu.vector_store %arg10[%c40_65, %c0_66], %51 {strides = array<i32>} : memref<72x256xf32, #tpu.memory_space<vmem>>, vector<8x256xf32>,
    %c0_67 = arith.constant 0 : index
    %c32_68 = arith.constant 32 : index
    %53 = vector.load %arg9[%c0_67, %c32_68] : memref<8x384xf32, #tpu.memory_space<vmem>>, vector<8x256xf32>
    %c48_69 = arith.constant 48 : index
    %c0_70 = arith.constant 0 : index
    %54 = vector.load %arg10[%c48_69, %c0_70] : memref<72x256xf32, #tpu.memory_space<vmem>>, vector<8x256xf32>
    tpu.vector_store %arg10[%c48_69, %c0_70], %53 {strides = array<i32>} : memref<72x256xf32, #tpu.memory_space<vmem>>, vector<8x256xf32>,
    %c0_71 = arith.constant 0 : index
    %c33_72 = arith.constant 33 : index
    %55 = vector.load %arg9[%c0_71, %c33_72] : memref<8x384xf32, #tpu.memory_space<vmem>>, vector<8x256xf32>
    %c56_73 = arith.constant 56 : index
    %c0_74 = arith.constant 0 : index
    %56 = vector.load %arg10[%c56_73, %c0_74] : memref<72x256xf32, #tpu.memory_space<vmem>>, vector<8x256xf32>
    tpu.vector_store %arg10[%c56_73, %c0_74], %55 {strides = array<i32>} : memref<72x256xf32, #tpu.memory_space<vmem>>, vector<8x256xf32>,
    %c0_75 = arith.constant 0 : index
    %c34_76 = arith.constant 34 : index
    %57 = vector.load %arg9[%c0_75, %c34_76] : memref<8x384xf32, #tpu.memory_space<vmem>>, vector<8x256xf32>
    %c64_77 = arith.constant 64 : index
    %c0_78 = arith.constant 0 : index
    %58 = vector.load %arg10[%c64_77, %c0_78] : memref<72x256xf32, #tpu.memory_space<vmem>>, vector<8x256xf32>
    tpu.vector_store %arg10[%c64_77, %c0_78], %57 {strides = array<i32>} : memref<72x256xf32, #tpu.memory_space<vmem>>, vector<8x256xf32>,
    %c0_79 = arith.constant 0 : index
    %c0_80 = arith.constant 0 : index
    %59 = vector.load %arg4[%c0_79, %c0_80] : memref<8x72xf32, #tpu.memory_space<vmem>>, vector<8x72xf32>
    %c0_81 = arith.constant 0 : index
    %c0_82 = arith.constant 0 : index
    %60 = vector.load %arg10[%c0_81, %c0_82] : memref<72x256xf32, #tpu.memory_space<vmem>>, vector<72x256xf32>
    %cst_83 = arith.constant dense<0.000000e+00> : vector<8x256xf32>
    %61 = tpu.matmul %59, %60, %cst_83 {dimension_numbers = #tpu.dot_dimension_numbers<[1], [0], [0], [1], [0, 0, 1, 1], [], []>} : vector<8x72xf32>, vector<72x256xf32>, vector<8x256xf32> -> vector<8x256xf32>
    %c0_84 = arith.constant 0 : index
    %c0_85 = arith.constant 0 : index
    %62 = vector.load %arg5[%c0_84, %c0_85] : memref<8x1xf32, #tpu.memory_space<vmem>>, vector<8x1xf32>
    %63 = vector.broadcast %62 : vector<8x1xf32> to vector<8x256xf32>
    %64 = arith.addf %61, %63 : vector<8x256xf32>
    %cst_86 = arith.constant 0.000000e+00 : f32
    %65 = vector.broadcast %cst_86 : f32 to vector<8x256xf32>
    %66 = arith.maximumf %64, %65 : vector<8x256xf32>
    %c0_87 = arith.constant 0 : index
    %c0_88 = arith.constant 0 : index
    %c0_89 = arith.constant 0 : index
    %67 = vector.load %arg7[%c0_87, %c0_88, %c0_89] : memref<1x8x256xf32, #tpu.memory_space<vmem>>, vector<1x8x256xf32>
    %68 = vector.shape_cast %67 : vector<1x8x256xf32> to vector<8x256xf32>
    %69 = vector.shape_cast %66 : vector<8x256xf32> to vector<1x8x256xf32>
    tpu.vector_store %arg7[%c0_87, %c0_88, %c0_89], %69 {strides = array<i32>} : memref<1x8x256xf32, #tpu.memory_space<vmem>>, vector<1x8x256xf32>,
    return
  }
  func.func @transform_0(%arg0: i32) -> (i32, i32, i32) {
    %c0_i32 = arith.constant 0 : i32
    %c0_i32_0 = arith.constant 0 : i32
    %c0_i32_1 = arith.constant 0 : i32
    return %arg0, %c0_i32, %c0_i32_0 : i32, i32, i32
  }
  func.func @transform_1(%arg0: i32) -> (i32, i32) {
    %c0_i32 = arith.constant 0 : i32
    %c0_i32_0 = arith.constant 0 : i32
    %c0_i32_1 = arith.constant 0 : i32
    return %c0_i32, %c0_i32_0 : i32, i32
  }
  func.func @transform_2(%arg0: i32) -> (i32, i32) {
    %c0_i32 = arith.constant 0 : i32
    %c0_i32_0 = arith.constant 0 : i32
    %c0_i32_1 = arith.constant 0 : i32
    return %c0_i32, %c0_i32_0 : i32, i32
  }
  func.func @transform_3(%arg0: i32) -> (i32, i32) {
    %c0_i32 = arith.constant 0 : i32
    %c0_i32_0 = arith.constant 0 : i32
    %c0_i32_1 = arith.constant 0 : i32
    return %c0_i32, %c0_i32_0 : i32, i32
  }
  func.func @transform_4(%arg0: i32) -> (i32, i32) {
    %c0_i32 = arith.constant 0 : i32
    %c0_i32_0 = arith.constant 0 : i32
    %c0_i32_1 = arith.constant 0 : i32
    return %c0_i32, %c0_i32_0 : i32, i32
  }
  func.func @transform_5(%arg0: i32) -> (i32, i32) {
    %c0_i32 = arith.constant 0 : i32
    %c0_i32_0 = arith.constant 0 : i32
    %c0_i32_1 = arith.constant 0 : i32
    return %c0_i32, %c0_i32_0 : i32, i32
  }
  func.func @transform_6(%arg0: i32) -> (i32, i32, i32) {
    %c0_i32 = arith.constant 0 : i32
    %c0_i32_0 = arith.constant 0 : i32
    %c0_i32_1 = arith.constant 0 : i32
    return %arg0, %c0_i32, %c0_i32_0 : i32, i32, i32
  }
}

module attributes {stable_mosaic.version = 11 : i64} {
  func.func @_fused_block_kernel(%arg0: i32, %arg1: memref<1x8x384xf32, #tpu.memory_space<vmem>>, %arg2: memref<8x72xf32, #tpu.memory_space<vmem>>, %arg3: memref<8x1xf32, #tpu.memory_space<vmem>>, %arg4: memref<8x72xf32, #tpu.memory_space<vmem>>, %arg5: memref<8x1xf32, #tpu.memory_space<vmem>>, %arg6: memref<1x256xf32, #tpu.memory_space<vmem>>, %arg7: memref<1x8x256xf32, #tpu.memory_space<vmem>>, %arg8: memref<72x256xf32, #tpu.memory_space<vmem>>, %arg9: memref<8x384xf32, #tpu.memory_space<vmem>>, %arg10: memref<72x256xf32, #tpu.memory_space<vmem>>) attributes {dimension_semantics = [#tpu.dimension_semantics<parallel>], iteration_bounds = array<i64: 2>, scalar_prefetch = 0 : i64, scratch_operands = 3 : i64, tpu.core_type = #tpu.core_type<tc>, window_params = [{transform_indices = @transform_0, window_bounds = array<i64: 1, 8, 384>}, {pipeline_mode = #tpu.pipeline_mode<synchronous>, transform_indices = @transform_1, window_bounds = array<i64: 8, 72>}, {pipeline_mode = #tpu.pipeline_mode<synchronous>, transform_indices = @transform_2, window_bounds = array<i64: 8, 1>}, {pipeline_mode = #tpu.pipeline_mode<synchronous>, transform_indices = @transform_3, window_bounds = array<i64: 8, 72>}, {pipeline_mode = #tpu.pipeline_mode<synchronous>, transform_indices = @transform_4, window_bounds = array<i64: 8, 1>}, {pipeline_mode = #tpu.pipeline_mode<synchronous>, transform_indices = @transform_5, window_bounds = array<i64: 1, 256>}, {transform_indices = @transform_6, window_bounds = array<i64: 1, 8, 256>}]} {
    %c0 = arith.constant 0 : index
    %c0_0 = arith.constant 0 : index
    %c0_1 = arith.constant 0 : index
    %0 = vector.load %arg1[%c0, %c0_0, %c0_1] : memref<1x8x384xf32, #tpu.memory_space<vmem>>, vector<1x8x256xf32>
    %1 = vector.shape_cast %0 : vector<1x8x256xf32> to vector<8x256xf32>
    %c0_2 = arith.constant 0 : index
    %c0_3 = arith.constant 0 : index
    %2 = vector.load %arg8[%c0_2, %c0_3] : memref<72x256xf32, #tpu.memory_space<vmem>>, vector<8x256xf32>
    tpu.vector_store %arg8[%c0_2, %c0_3], %1 {strides = array<i32>} : memref<72x256xf32, #tpu.memory_space<vmem>>, vector<8x256xf32>,
    %c0_4 = arith.constant 0 : index
    %c0_5 = arith.constant 0 : index
    %c1 = arith.constant 1 : index
    %3 = vector.load %arg1[%c0_4, %c0_5, %c1] : memref<1x8x384xf32, #tpu.memory_space<vmem>>, vector<1x8x256xf32>
    %4 = vector.shape_cast %3 : vector<1x8x256xf32> to vector<8x256xf32>
    %c8 = arith.constant 8 : index
    %c0_6 = arith.constant 0 : index
    %5 = vector.load %arg8[%c8, %c0_6] : memref<72x256xf32, #tpu.memory_space<vmem>>, vector<8x256xf32>
    tpu.vector_store %arg8[%c8, %c0_6], %4 {strides = array<i32>} : memref<72x256xf32, #tpu.memory_space<vmem>>, vector<8x256xf32>,
    %c0_7 = arith.constant 0 : index
    %c0_8 = arith.constant 0 : index
    %c2 = arith.constant 2 : index
    %6 = vector.load %arg1[%c0_7, %c0_8, %c2] : memref<1x8x384xf32, #tpu.memory_space<vmem>>, vector<1x8x256xf32>
    %7 = vector.shape_cast %6 : vector<1x8x256xf32> to vector<8x256xf32>
    %c16 = arith.constant 16 : index
    %c0_9 = arith.constant 0 : index
    %8 = vector.load %arg8[%c16, %c0_9] : memref<72x256xf32, #tpu.memory_space<vmem>>, vector<8x256xf32>
    tpu.vector_store %arg8[%c16, %c0_9], %7 {strides = array<i32>} : memref<72x256xf32, #tpu.memory_space<vmem>>, vector<8x256xf32>,
    %c0_10 = arith.constant 0 : index
    %c0_11 = arith.constant 0 : index
    %c16_12 = arith.constant 16 : index
    %9 = vector.load %arg1[%c0_10, %c0_11, %c16_12] : memref<1x8x384xf32, #tpu.memory_space<vmem>>, vector<1x8x256xf32>
    %10 = vector.shape_cast %9 : vector<1x8x256xf32> to vector<8x256xf32>
    %c24 = arith.constant 24 : index
    %c0_13 = arith.constant 0 : index
    %11 = vector.load %arg8[%c24, %c0_13] : memref<72x256xf32, #tpu.memory_space<vmem>>, vector<8x256xf32>
    tpu.vector_store %arg8[%c24, %c0_13], %10 {strides = array<i32>} : memref<72x256xf32, #tpu.memory_space<vmem>>, vector<8x256xf32>,
    %c0_14 = arith.constant 0 : index
    %c0_15 = arith.constant 0 : index
    %c17 = arith.constant 17 : index
    %12 = vector.load %arg1[%c0_14, %c0_15, %c17] : memref<1x8x384xf32, #tpu.memory_space<vmem>>, vector<1x8x256xf32>
    %13 = vector.shape_cast %12 : vector<1x8x256xf32> to vector<8x256xf32>
    %c32 = arith.constant 32 : index
    %c0_16 = arith.constant 0 : index
    %14 = vector.load %arg8[%c32, %c0_16] : memref<72x256xf32, #tpu.memory_space<vmem>>, vector<8x256xf32>
    tpu.vector_store %arg8[%c32, %c0_16], %13 {strides = array<i32>} : memref<72x256xf32, #tpu.memory_space<vmem>>, vector<8x256xf32>,
    %c0_17 = arith.constant 0 : index
    %c0_18 = arith.constant 0 : index
    %c18 = arith.constant 18 : index
    %15 = vector.load %arg1[%c0_17, %c0_18, %c18] : memref<1x8x384xf32, #tpu.memory_space<vmem>>, vector<1x8x256xf32>
    %16 = vector.shape_cast %15 : vector<1x8x256xf32> to vector<8x256xf32>
    %c40 = arith.constant 40 : index
    %c0_19 = arith.constant 0 : index
    %17 = vector.load %arg8[%c40, %c0_19] : memref<72x256xf32, #tpu.memory_space<vmem>>, vector<8x256xf32>
    tpu.vector_store %arg8[%c40, %c0_19], %16 {strides = array<i32>} : memref<72x256xf32, #tpu.memory_space<vmem>>, vector<8x256xf32>,
    %c0_20 = arith.constant 0 : index
    %c0_21 = arith.constant 0 : index
    %c32_22 = arith.constant 32 : index
    %18 = vector.load %arg1[%c0_20, %c0_21, %c32_22] : memref<1x8x384xf32, #tpu.memory_space<vmem>>, vector<1x8x256xf32>
    %19 = vector.shape_cast %18 : vector<1x8x256xf32> to vector<8x256xf32>
    %c48 = arith.constant 48 : index
    %c0_23 = arith.constant 0 : index
    %20 = vector.load %arg8[%c48, %c0_23] : memref<72x256xf32, #tpu.memory_space<vmem>>, vector<8x256xf32>
    tpu.vector_store %arg8[%c48, %c0_23], %19 {strides = array<i32>} : memref<72x256xf32, #tpu.memory_space<vmem>>, vector<8x256xf32>,
    %c0_24 = arith.constant 0 : index
    %c0_25 = arith.constant 0 : index
    %c33 = arith.constant 33 : index
    %21 = vector.load %arg1[%c0_24, %c0_25, %c33] : memref<1x8x384xf32, #tpu.memory_space<vmem>>, vector<1x8x256xf32>
    %22 = vector.shape_cast %21 : vector<1x8x256xf32> to vector<8x256xf32>
    %c56 = arith.constant 56 : index
    %c0_26 = arith.constant 0 : index
    %23 = vector.load %arg8[%c56, %c0_26] : memref<72x256xf32, #tpu.memory_space<vmem>>, vector<8x256xf32>
    tpu.vector_store %arg8[%c56, %c0_26], %22 {strides = array<i32>} : memref<72x256xf32, #tpu.memory_space<vmem>>, vector<8x256xf32>,
    %c0_27 = arith.constant 0 : index
    %c0_28 = arith.constant 0 : index
    %c34 = arith.constant 34 : index
    %24 = vector.load %arg1[%c0_27, %c0_28, %c34] : memref<1x8x384xf32, #tpu.memory_space<vmem>>, vector<1x8x256xf32>
    %25 = vector.shape_cast %24 : vector<1x8x256xf32> to vector<8x256xf32>
    %c64 = arith.constant 64 : index
    %c0_29 = arith.constant 0 : index
    %26 = vector.load %arg8[%c64, %c0_29] : memref<72x256xf32, #tpu.memory_space<vmem>>, vector<8x256xf32>
    tpu.vector_store %arg8[%c64, %c0_29], %25 {strides = array<i32>} : memref<72x256xf32, #tpu.memory_space<vmem>>, vector<8x256xf32>,
    %c0_30 = arith.constant 0 : index
    %c0_31 = arith.constant 0 : index
    %27 = vector.load %arg2[%c0_30, %c0_31] : memref<8x72xf32, #tpu.memory_space<vmem>>, vector<8x72xf32>
    %c0_32 = arith.constant 0 : index
    %c0_33 = arith.constant 0 : index
    %28 = vector.load %arg8[%c0_32, %c0_33] : memref<72x256xf32, #tpu.memory_space<vmem>>, vector<72x256xf32>
    %cst = arith.constant dense<0.000000e+00> : vector<8x256xf32>
    %29 = tpu.matmul %27, %28, %cst {dimension_numbers = #tpu.dot_dimension_numbers<[1], [0], [0], [1], [0, 0, 1, 1], [], []>} : vector<8x72xf32>, vector<72x256xf32>, vector<8x256xf32> -> vector<8x256xf32>
    %c0_34 = arith.constant 0 : index
    %c0_35 = arith.constant 0 : index
    %30 = vector.load %arg3[%c0_34, %c0_35] : memref<8x1xf32, #tpu.memory_space<vmem>>, vector<8x1xf32>
    %31 = vector.broadcast %30 : vector<8x1xf32> to vector<8x256xf32>
    %32 = arith.addf %29, %31 : vector<8x256xf32>
    %cst_36 = arith.constant 0.000000e+00 : f32
    %33 = vector.broadcast %cst_36 : f32 to vector<8x256xf32>
    %34 = arith.maximumf %32, %33 : vector<8x256xf32>
    %c0_37 = arith.constant 0 : index
    %c0_38 = arith.constant 0 : index
    %35 = vector.load %arg6[%c0_37, %c0_38] : memref<1x256xf32, #tpu.memory_space<vmem>>, vector<1x256xf32>
    %36 = vector.broadcast %35 : vector<1x256xf32> to vector<8x256xf32>
    %37 = arith.mulf %34, %36 : vector<8x256xf32>
    %cst_39 = arith.constant 0.000000e+00 : f32
    %38 = vector.broadcast %cst_39 : f32 to vector<8x128xf32>
    %c0_40 = arith.constant 0 : index
    %c256 = arith.constant 256 : index
    %39 = vector.load %arg9[%c0_40, %c256] : memref<8x384xf32, #tpu.memory_space<vmem>>, vector<8x128xf32>
    tpu.vector_store %arg9[%c0_40, %c256], %38 {strides = array<i32>} : memref<8x384xf32, #tpu.memory_space<vmem>>, vector<8x128xf32>,
    %c0_41 = arith.constant 0 : index
    %c0_42 = arith.constant 0 : index
    %40 = vector.load %arg9[%c0_41, %c0_42] : memref<8x384xf32, #tpu.memory_space<vmem>>, vector<8x256xf32>
    tpu.vector_store %arg9[%c0_41, %c0_42], %37 {strides = array<i32>} : memref<8x384xf32, #tpu.memory_space<vmem>>, vector<8x256xf32>,
    %c0_43 = arith.constant 0 : index
    %c0_44 = arith.constant 0 : index
    %41 = vector.load %arg9[%c0_43, %c0_44] : memref<8x384xf32, #tpu.memory_space<vmem>>, vector<8x256xf32>
    %c0_45 = arith.constant 0 : index
    %c0_46 = arith.constant 0 : index
    %42 = vector.load %arg10[%c0_45, %c0_46] : memref<72x256xf32, #tpu.memory_space<vmem>>, vector<8x256xf32>
    tpu.vector_store %arg10[%c0_45, %c0_46], %41 {strides = array<i32>} : memref<72x256xf32, #tpu.memory_space<vmem>>, vector<8x256xf32>,
    %c0_47 = arith.constant 0 : index
    %c1_48 = arith.constant 1 : index
    %43 = vector.load %arg9[%c0_47, %c1_48] : memref<8x384xf32, #tpu.memory_space<vmem>>, vector<8x256xf32>
    %c8_49 = arith.constant 8 : index
    %c0_50 = arith.constant 0 : index
    %44 = vector.load %arg10[%c8_49, %c0_50] : memref<72x256xf32, #tpu.memory_space<vmem>>, vector<8x256xf32>
    tpu.vector_store %arg10[%c8_49, %c0_50], %43 {strides = array<i32>} : memref<72x256xf32, #tpu.memory_space<vmem>>, vector<8x256xf32>,
    %c0_51 = arith.constant 0 : index
    %c2_52 = arith.constant 2 : index
    %45 = vector.load %arg9[%c0_51, %c2_52] : memref<8x384xf32, #tpu.memory_space<vmem>>, vector<8x256xf32>
    %c16_53 = arith.constant 16 : index
    %c0_54 = arith.constant 0 : index
    %46 = vector.load %arg10[%c16_53, %c0_54] : memref<72x256xf32, #tpu.memory_space<vmem>>, vector<8x256xf32>
    tpu.vector_store %arg10[%c16_53, %c0_54], %45 {strides = array<i32>} : memref<72x256xf32, #tpu.memory_space<vmem>>, vector<8x256xf32>,
    %c0_55 = arith.constant 0 : index
    %c16_56 = arith.constant 16 : index
    %47 = vector.load %arg9[%c0_55, %c16_56] : memref<8x384xf32, #tpu.memory_space<vmem>>, vector<8x256xf32>
    %c24_57 = arith.constant 24 : index
    %c0_58 = arith.constant 0 : index
    %48 = vector.load %arg10[%c24_57, %c0_58] : memref<72x256xf32, #tpu.memory_space<vmem>>, vector<8x256xf32>
    tpu.vector_store %arg10[%c24_57, %c0_58], %47 {strides = array<i32>} : memref<72x256xf32, #tpu.memory_space<vmem>>, vector<8x256xf32>,
    %c0_59 = arith.constant 0 : index
    %c17_60 = arith.constant 17 : index
    %49 = vector.load %arg9[%c0_59, %c17_60] : memref<8x384xf32, #tpu.memory_space<vmem>>, vector<8x256xf32>
    %c32_61 = arith.constant 32 : index
    %c0_62 = arith.constant 0 : index
    %50 = vector.load %arg10[%c32_61, %c0_62] : memref<72x256xf32, #tpu.memory_space<vmem>>, vector<8x256xf32>
    tpu.vector_store %arg10[%c32_61, %c0_62], %49 {strides = array<i32>} : memref<72x256xf32, #tpu.memory_space<vmem>>, vector<8x256xf32>,
    %c0_63 = arith.constant 0 : index
    %c18_64 = arith.constant 18 : index
    %51 = vector.load %arg9[%c0_63, %c18_64] : memref<8x384xf32, #tpu.memory_space<vmem>>, vector<8x256xf32>
    %c40_65 = arith.constant 40 : index
    %c0_66 = arith.constant 0 : index
    %52 = vector.load %arg10[%c40_65, %c0_66] : memref<72x256xf32, #tpu.memory_space<vmem>>, vector<8x256xf32>
    tpu.vector_store %arg10[%c40_65, %c0_66], %51 {strides = array<i32>} : memref<72x256xf32, #tpu.memory_space<vmem>>, vector<8x256xf32>,
    %c0_67 = arith.constant 0 : index
    %c32_68 = arith.constant 32 : index
    %53 = vector.load %arg9[%c0_67, %c32_68] : memref<8x384xf32, #tpu.memory_space<vmem>>, vector<8x256xf32>
    %c48_69 = arith.constant 48 : index
    %c0_70 = arith.constant 0 : index
    %54 = vector.load %arg10[%c48_69, %c0_70] : memref<72x256xf32, #tpu.memory_space<vmem>>, vector<8x256xf32>
    tpu.vector_store %arg10[%c48_69, %c0_70], %53 {strides = array<i32>} : memref<72x256xf32, #tpu.memory_space<vmem>>, vector<8x256xf32>,
    %c0_71 = arith.constant 0 : index
    %c33_72 = arith.constant 33 : index
    %55 = vector.load %arg9[%c0_71, %c33_72] : memref<8x384xf32, #tpu.memory_space<vmem>>, vector<8x256xf32>
    %c56_73 = arith.constant 56 : index
    %c0_74 = arith.constant 0 : index
    %56 = vector.load %arg10[%c56_73, %c0_74] : memref<72x256xf32, #tpu.memory_space<vmem>>, vector<8x256xf32>
    tpu.vector_store %arg10[%c56_73, %c0_74], %55 {strides = array<i32>} : memref<72x256xf32, #tpu.memory_space<vmem>>, vector<8x256xf32>,
    %c0_75 = arith.constant 0 : index
    %c34_76 = arith.constant 34 : index
    %57 = vector.load %arg9[%c0_75, %c34_76] : memref<8x384xf32, #tpu.memory_space<vmem>>, vector<8x256xf32>
    %c64_77 = arith.constant 64 : index
    %c0_78 = arith.constant 0 : index
    %58 = vector.load %arg10[%c64_77, %c0_78] : memref<72x256xf32, #tpu.memory_space<vmem>>, vector<8x256xf32>
    tpu.vector_store %arg10[%c64_77, %c0_78], %57 {strides = array<i32>} : memref<72x256xf32, #tpu.memory_space<vmem>>, vector<8x256xf32>,
    %c0_79 = arith.constant 0 : index
    %c0_80 = arith.constant 0 : index
    %59 = vector.load %arg4[%c0_79, %c0_80] : memref<8x72xf32, #tpu.memory_space<vmem>>, vector<8x72xf32>
    %c0_81 = arith.constant 0 : index
    %c0_82 = arith.constant 0 : index
    %60 = vector.load %arg10[%c0_81, %c0_82] : memref<72x256xf32, #tpu.memory_space<vmem>>, vector<72x256xf32>
    %cst_83 = arith.constant dense<0.000000e+00> : vector<8x256xf32>
    %61 = tpu.matmul %59, %60, %cst_83 {dimension_numbers = #tpu.dot_dimension_numbers<[1], [0], [0], [1], [0, 0, 1, 1], [], []>} : vector<8x72xf32>, vector<72x256xf32>, vector<8x256xf32> -> vector<8x256xf32>
    %c0_84 = arith.constant 0 : index
    %c0_85 = arith.constant 0 : index
    %62 = vector.load %arg5[%c0_84, %c0_85] : memref<8x1xf32, #tpu.memory_space<vmem>>, vector<8x1xf32>
    %63 = vector.broadcast %62 : vector<8x1xf32> to vector<8x256xf32>
    %64 = arith.addf %61, %63 : vector<8x256xf32>
    %cst_86 = arith.constant 0.000000e+00 : f32
    %65 = vector.broadcast %cst_86 : f32 to vector<8x256xf32>
    %66 = arith.maximumf %64, %65 : vector<8x256xf32>
    %c0_87 = arith.constant 0 : index
    %c0_88 = arith.constant 0 : index
    %c0_89 = arith.constant 0 : index
    %67 = vector.load %arg7[%c0_87, %c0_88, %c0_89] : memref<1x8x256xf32, #tpu.memory_space<vmem>>, vector<1x8x256xf32>
    %68 = vector.shape_cast %67 : vector<1x8x256xf32> to vector<8x256xf32>
    %69 = vector.shape_cast %66 : vector<8x256xf32> to vector<1x8x256xf32>
    tpu.vector_store %arg7[%c0_87, %c0_88, %c0_89], %69 {strides = array<i32>} : memref<1x8x256xf32, #tpu.memory_space<vmem>>, vector<1x8x256xf32>,
    return
  }
  func.func @transform_0(%arg0: i32) -> (i32, i32, i32) {
    %c0_i32 = arith.constant 0 : i32
    %c0_i32_0 = arith.constant 0 : i32
    %c0_i32_1 = arith.constant 0 : i32
    return %arg0, %c0_i32, %c0_i32_0 : i32, i32, i32
  }
  func.func @transform_1(%arg0: i32) -> (i32, i32) {
    %c0_i32 = arith.constant 0 : i32
    %c0_i32_0 = arith.constant 0 : i32
    %c0_i32_1 = arith.constant 0 : i32
    return %c0_i32, %c0_i32_0 : i32, i32
  }
  func.func @transform_2(%arg0: i32) -> (i32, i32) {
    %c0_i32 = arith.constant 0 : i32
    %c0_i32_0 = arith.constant 0 : i32
    %c0_i32_1 = arith.constant 0 : i32
    return %c0_i32, %c0_i32_0 : i32, i32
  }
  func.func @transform_3(%arg0: i32) -> (i32, i32) {
    %c0_i32 = arith.constant 0 : i32
    %c0_i32_0 = arith.constant 0 : i32
    %c0_i32_1 = arith.constant 0 : i32
    return %c0_i32, %c0_i32_0 : i32, i32
  }
  func.func @transform_4(%arg0: i32) -> (i32, i32) {
    %c0_i32 = arith.constant 0 : i32
    %c0_i32_0 = arith.constant 0 : i32
    %c0_i32_1 = arith.constant 0 : i32
    return %c0_i32, %c0_i32_0 : i32, i32
  }
  func.func @transform_5(%arg0: i32) -> (i32, i32) {
    %c0_i32 = arith.constant 0 : i32
    %c0_i32_0 = arith.constant 0 : i32
    %c0_i32_1 = arith.constant 0 : i32
    return %c0_i32, %c0_i32_0 : i32, i32
  }
  func.func @transform_6(%arg0: i32) -> (i32, i32, i32) {
    %c0_i32 = arith.constant 0 : i32
    %c0_i32_0 = arith.constant 0 : i32
    %c0_i32_1 = arith.constant 0 : i32
    return %arg0, %c0_i32, %c0_i32_0 : i32, i32, i32
  }
}

</mosaic_0001>

<bundles_post_ra>
// kernel: tpu_custom_call.1
= control target key start
LH: loop header
LB: loop body
LE: loop exit
PB: predicated region body
PF: predicated region fallthrough
CT: control target
= control target key end

     0   :  { %11 = vsyncpa [#allocation6], 0  ;;  %s1444_s0 = inlined_call_operand.hbm [shape: f32[2,8,384], index: 0, kind: input, shape index: {}]   ;;  %s1445_s1 = inlined_call_operand.vmem [shape: f32[8,72], index: 1, kind: input, shape index: {}]   ;;  %s1446_s2 = inlined_call_operand.vmem [shape: f32[8,1], index: 2, kind: input, shape index: {}]   ;;  %s1447_s3 = inlined_call_operand.vmem [shape: f32[8,72], index: 3, kind: input, shape index: {}]   ;;  %s1448_s4 = inlined_call_operand.vmem [shape: f32[8,1], index: 4, kind: input, shape index: {}]   ;;  %s1449_s5 = inlined_call_operand.vmem [shape: f32[1,256], index: 5, kind: input, shape index: {}]   ;;  %s1450_s6 = inlined_call_operand.hbm [shape: f32[2,8,256], index: 6, kind: output, shape index: {}]  }
   0x1   :  { %13 = vsyncpa [#allocation6 + $0x1], 0 }
   0x2   :  { %14 = vsyncpa [#allocation7], 0 }
   0x3   :  { %16 = vsyncpa [#allocation7 + $0x1], 0  ;;  %s1201_s21 = smov 0   ;;  %s1203_s22 = smov 0  }
   0x4   :  { %s1205_s23 = smov 0   ;;  %s1207_s24 = smov 0  }
   0x5 LB: > { %s1222_s25 = sadd.s32 4294967295, %s1152_s24   ;;  %s879_s26 = sadd.s32 4294967294, %s1152_s24   ;;  %s1152_s24 = sphi %s1207_s24, %s1464_s24   ;;  %s1148_s23 = sphi %s1205_s23, %s1463_s23   ;;  %s1144_s22 = sphi %s1203_s22, %s1462_s22   ;;  %s1140_s21 = sphi %s1201_s21, %s1461_s21  }
   0x6   : > { %s1226_s27 = sadd.s32 1, %s1152_s24   ;;  %s29_s28 = sadd.s32 1, %s1148_s23 }
   0x7   : > { %s26_s29 = ssub.s32 %s1152_s24, %s1226_s27  ;;  %p36_p0 = scmp.ne.s32.totalorder %s1148_s23, %s1144_s22 }
   0x8   : > { %p27_p1 = scmp.eq.s32.totalorder %s26_s29, 0  ;;  %p37_p2 = scmp.eq.s32.totalorder %s1152_s24, 0 }
   0x9   : > { %p42_p3 = scmp.ne.s32.totalorder %s1144_s22, %s1140_s21  ;;  %p43_p4 = scmp.eq.s32.totalorder %s1222_s25, 0 }
   0xa   : > { %s1238_s30 = scalar_select %p27_p1, %s1148_s23, %s29_s28  }
   0xb   : > { %p38_p5 = por %p37_p2, %p36_p0  ;;  %p1240_p6 = por %p43_p4, %p42_p3 }
   0xc   : > { %p171_p7 = scmp.eq.s32.totalorder %s1222_s25, 1  ;;  %p177_p8 = scmp.eq.s32.totalorder %s879_s26, 1 }
   0xd   : > { %p940_p10 = scmp.lt.s32.totalorder %s1152_s24, 2  ;;  %s212_s10 = sand.u32 1, %s1148_s23  }
   0xe   : > { %p1247_p11 = por %p171_p7, %p36_p0  ;;  %p1251_p12 = por %p177_p8, %p42_p3 }
   0xf   : > { %s926_s11 = smul.u32 384, %s1152_s24  ;;  %p1262_p13 = pnand %p940_p10, %p38_p5 }
  0x10   : > { %s1453_s8 = scalar_select %p1247_p11, 1, 0 }
  0x11   : > { %s1454_s9 = scalar_select %p1251_p12, 1, 0 }
  0x12   : > { %s925_s12 = smul.u32 24, %s212_s10  ;;  %s1260_s15 = scalar_lea.hbm %s1444_s0, %s926_s11 }
  0x13   : > { %s213_s19 = scalar_lea.sflag [#allocation6], %s212_s10  ;;  %s1056_s20 = scalar_lea.hbm %s1260_s15, 384 }
  0x14   : > { %s216_s17 = scalar_lea.vmem [#allocation5], %s925_s12  ;;  %p1057_p2 = scmp.ne.s32.totalorder %s1260_s15, %s1056_s20 }
  0x15   : > { %s224_s18 = sshll.u32 %s216_s17, 4  ;;  %p1058_p3 = pneg %p1262_p13  ;;  %s1267_s18 = int_to_ptr.vmem [resolvable:$true] %s224_s18 }
  0x16   : > { %s1061_s29 = scalar_lea.hbm %s1444_s0, 768  ;;  %p1062_p7 = scmp.lt.u32.totalorder %s1260_s15, %s1444_s0 }
  0x17   : > { %p1059_p4 = pnand %p1058_p3, %p1057_p2  ;;  %p1063_p8 = scmp.lt.u32.totalorder %s1061_s29, %s1056_s20 }
  0x18   : > { %p1065_p9 = scmp.lt.u32.totalorder %s1056_s20, %s1260_s15 }
  0x19   : > { %p1060_p5 = pneg %p1059_p4  ;;  %p1064_p10 = por %p1063_p8, %p1062_p7 }
  0x1b   : > { %p1066_p0 = por %p1065_p9, %p1064_p10 }
  0x1d   : > { %p1067_p1 = pnand %p1066_p0, %p1060_p5 }
  0x1f   : > { %1070 = shalt.err (!%p1067_p1)
}
  0x20   : > { %s1071_s10 = scalar_lea.vmem %s1267_s18, 384  ;;  %s1154_s12 = smov [#allocation5]  }
  0x21   : > { %p1072_p2 = scmp.ne.s32.totalorder %s1267_s18, %s1071_s10  ;;  %s1076_s14 = sshll.u32 %s1154_s12, 4  ;;  %s1077_s14 = int_to_ptr.vmem [resolvable:$false] %s1076_s14 }
  0x22   : > { %s1078_s17 = scalar_lea.vmem %s1077_s14, 768  ;;  %p1079_p11 = scmp.lt.s32.totalorder %s1267_s18, %s1077_s14 }
  0x23   : > { %p1074_p4 = pnand %p1072_p2, %p1058_p3  ;;  %p1080_p7 = scmp.lt.s32.totalorder %s1078_s17, %s1071_s10 }
  0x25   : > { %p1075_p12 = pneg %p1074_p4  ;;  %p1081_p8 = por %p1080_p7, %p1079_p11 }
  0x27   : > { %p1082_p9 = pnand %p1081_p8, %p1075_p12 }
  0x29   : > { %1085 = shalt.err (!%p1082_p9)
}
  0x2a   : > { %935 = dma.hbm_to_vmem [thread:$0]  (!%p1262_p13), %s1260_s15, 384, %s1267_s18, %s213_s19  }
  0x2b   : > { %p1456_p0 = scmp.lt.s32.totalorder %s1152_s24, 3  ;;  %p1457_p1 = scmp.ge.s32.totalorder %s1152_s24, 1 }
  0x2d   : > { %p230_p3 = pnand %p1457_p1, %p1456_p0 }
  0x2e   : > { %s1300_s20 = sand.u32 (!%p230_p3), 1, %s1144_s22  }
  0x2f   : > { %233 = sbr.rel (%p230_p3) target bundleno = 806 (0x326), region = 44  ;;  %s236_s28 = scalar_lea.sflag (!%p230_p3), [#allocation6], %s1300_s20 }
  0x30   : > { %s927_s26 = smul.u32 (!%p230_p3), 24, %s1300_s20 }
  0x32   : > { %s239_s29 = scalar_lea.vmem (!%p230_p3), [#allocation5], %s927_s26 }
  0x36   : > { %1131 = dma.done.wait (%p1240_p6), %s236_s28, 384  }
  0x37   : > { %1133 = vsyncadd (%p1240_p6), %s236_s28, 4294966912  ;;  %v292_v0 = vld [vmem:[%s239_s29 + $0x8] sm:$0xff]  ;;  %v293_v1 = vld [vmem:[%s239_s29 + $0x10] sm:$0xff]  ;;  %s1155_s15 = smov 126   ;;  %s1156_s16 = smov 127   ;;  %v1162_v4 = vmov 0.0   ;;  %v528_v63 = vlaneseq }
  0x38   : > { %v989_v2 = vpack.i.bf16 %v293_v1, %v292_v0  ;;  %v272_v3 = vld [vmem:[%s239_s29] sm:$0xff]  ;;  %s1157_s18 = smov 112   ;;  %s1158_s7 = smov 110   ;;  %517 = vmatprep.mubr.f32.mxu0 %v1162_v4  ;;  %783 = vmatprep.mubr.f32.mxu1 %v1162_v4  ;;  %v1163_v5 = vmov 0   ;;  %vm284_vm0 = vcmask 1039360   ;;  %vm322_vm1 = vcmask 916480  }
  0x39   : > { %s1159_s19 = smov 111   ;;  %s1160_s11 = smov 95   ;;  %1019 = vset.pattern.permute.xlu1 %v1163_v5  ;;  %1055 = vset.pattern.permute.xlu0 %v1163_v5  ;;  %v443_v6 = vld [vmem:[%s1446_s2] sm:$0xff]  ;;  %vm303_vm2 = vcmask 1031168   ;;  %vm360_vm3 = vcmask 900096   ;;  %vm341_vm4 = vcmask 908288  }
  0x3a   : > { %990 = vrot.lane.b32.xlu1 %v989_v2, %s1155_s15  ;;  %985 = vrot.lane.b32.xlu0 %v989_v2, %s1156_s16  ;;  %s1161_s13 = smov 96   ;;  %s1164_s10 = smov 94   ;;  %vm398_vm5 = vcmask 777216   ;;  %vm379_vm6 = vcmask 785408   ;;  %vm417_vm7 = vcmask 769024   ;;  %v424_v61 = vld [vmem:[%s1445_s1] sm:$0xff] }
  0x3b   : > { %vm449_vm8 = vcmask 588800   ;;  %s795_s26 = scalar_lea.sflag [#allocation7], %s1300_s20  ;;  %p1458_p11 = scmp.ne.s32.totalorder %s1453_s8, 0 }
  0x3e   : > { %995 = vrot.lane.b32.xlu1 %v989_v2, %s1157_s18  ;;  %278 = vrot.lane.b32.xlu0 %v272_v3, %s1156_s16 }
  0x42   : > { %316 = vrot.lane.b32.xlu1 %v272_v3, %s1157_s18  ;;  %297 = vrot.lane.b32.xlu0 %v272_v3, %s1155_s15 }
  0x46   : > { %1005 = vrot.lane.b32.xlu1 %v989_v2, %s1158_s7  ;;  %1000 = vrot.lane.b32.xlu0 %v989_v2, %s1159_s19 }
  0x4a   : > { %354 = vrot.lane.b32.xlu1 %v272_v3, %s1158_s7  ;;  %335 = vrot.lane.b32.xlu0 %v272_v3, %s1159_s19 }
  0x4e   : > { %1015 = vrot.lane.b32.xlu1 %v989_v2, %s1160_s11  ;;  %1010 = vrot.lane.b32.xlu0 %v989_v2, %s1161_s13 }
  0x52   : > { %392 = vrot.lane.b32.xlu1 %v272_v3, %s1160_s11  ;;  %373 = vrot.lane.b32.xlu0 %v272_v3, %s1161_s13 }
  0x56   : > { %415 = vrot.lane.b32.xlu1 %v293_v1, %s1164_s10  ;;  %413 = vrot.lane.b32.xlu0 %v292_v0, %s1164_s10 }
  0x5a   : > { %411 = vrot.lane.b32.xlu0 %v272_v3, %s1164_s10  ;;  %446 = vperm.xlu1 %1019, %v443_v6  }
  0xac   : > { %v991_v7 = vpop.permute.xlu1 %990  ;;  %v986_v8 = vpop.permute.xlu0 %985 }
  0xad   : > { %v988_v9 = vunpack.i.h.bf16 %v986_v8  ;;  %v987_v10 = vunpack.i.l.bf16 %v986_v8  ;;  %v993_v11 = vunpack.i.h.bf16 %v991_v7  ;;  %v992_v12 = vunpack.i.l.bf16 %v991_v7 }
  0xaf   : > { %v286_v13 = vsel %vm284_vm0, %v987_v10, %v988_v9  ;;  %v305_v21 = vsel %vm303_vm2, %v992_v12, %v993_v11 }
  0xb0   : > { %v996_v14 = vpop.permute.xlu1 %995  ;;  %v279_v15 = vpop.permute.xlu0 %278  ;;  %v893_v16 = vpack.c.bf16 %v286_v13, %v292_v0  ;;  %v529_v0 = vshrl.u32 %v528_v63, 7 }
  0xb1   : > { %v998_v17 = vunpack.i.h.bf16 %v996_v14  ;;  %v997_v18 = vunpack.i.l.bf16 %v996_v14  ;;  %v285_v19 = vsel %vm284_vm0, %v279_v15, %v987_v10 }
  0xb2   : > { %894 = vmatprep.subr.bf16.mxu0 %v893_v16  ;;  %v895_v20 = vpack.c.bf16 %v285_v19, %v272_v3  ;;  %v530_v1 = vsub.s32 0, %v529_v0  ;;  %v526_v3 = vld [vmem:[%s1449_s5] sm:$0x3] }
  0xb3   : > { %v324_v22 = vsel %vm322_vm1, %v997_v18, %v998_v17  ;;  %v710_v17 = vld [vmem:[%s1448_s4] sm:$0xff] }
  0xb4   : > { %v317_v23 = vpop.permute.xlu1 %316  ;;  %v298_v24 = vpop.permute.xlu0 %297  ;;  %896 = vmatpush1.bf16.msra.mxu0 %v895_v20  ;;  %v897_v25 = vpack.c.bf16 %v324_v22, %v305_v21  ;;  %v531_v7 = vrot.slane %v526_v3, %v530_v1 }
  0xb5   : > { %v323_v26 = vsel %vm322_vm1, %v317_v23, %v997_v18  ;;  %v304_v27 = vsel %vm303_vm2, %v298_v24, %v992_v12  ;;  %v534_v12 = vsub.s32 1, %v529_v0 }
  0xb6   : > { %v899_v28 = vpack.c.bf16 %v323_v26, %v304_v27  ;;  %898 = vmatprep.subr.bf16.mxu0 %v897_v25 }
  0xb7   : > { %v535_v14 = vrot.slane %v526_v3, %v534_v12 }
  0xb8   : > { %v1006_v29 = vpop.permute.xlu1 %1005  ;;  %v1001_v30 = vpop.permute.xlu0 %1000  ;;  %900 = vmatpush1.bf16.msra.mxu0 %v899_v28 }
  0xb9   : > { %v1008_v31 = vunpack.i.h.bf16 %v1006_v29  ;;  %v1007_v32 = vunpack.i.l.bf16 %v1006_v29  ;;  %v1003_v33 = vunpack.i.h.bf16 %v1001_v30  ;;  %v1002_v34 = vunpack.i.l.bf16 %v1001_v30 }
  0xbb   : > { %v343_v35 = vsel %vm341_vm4, %v1002_v34, %v1003_v33  ;;  %v362_v36 = vsel %vm360_vm3, %v1007_v32, %v1008_v31 }
  0xbc   : > { %v355_v37 = vpop.permute.xlu1 %354  ;;  %v336_v38 = vpop.permute.xlu0 %335  ;;  %v901_v39 = vpack.c.bf16 %v362_v36, %v343_v35 }
  0xbd   : > { %v361_v40 = vsel %vm360_vm3, %v355_v37, %v1007_v32  ;;  %v342_v41 = vsel %vm341_vm4, %v336_v38, %v1002_v34 }
  0xbe   : > { %v903_v42 = vpack.c.bf16 %v361_v40, %v342_v41  ;;  %902 = vmatprep.subr.bf16.mxu0 %v901_v39 }
  0xc0   : > { %v1016_v43 = vpop.permute.xlu1 %1015  ;;  %v1011_v44 = vpop.permute.xlu0 %1010  ;;  %904 = vmatpush1.bf16.msra.mxu0 %v903_v42 }
  0xc1   : > { %v1018_v45 = vunpack.i.h.bf16 %v1016_v43  ;;  %v1017_v46 = vunpack.i.l.bf16 %v1016_v43  ;;  %v1013_v47 = vunpack.i.h.bf16 %v1011_v44  ;;  %v1012_v48 = vunpack.i.l.bf16 %v1011_v44 }
  0xc3   : > { %v381_v49 = vsel %vm379_vm6, %v1012_v48, %v1013_v47  ;;  %v400_v50 = vsel %vm398_vm5, %v1017_v46, %v1018_v45 }
  0xc4   : > { %v393_v51 = vpop.permute.xlu1 %392  ;;  %v374_v52 = vpop.permute.xlu0 %373  ;;  %v905_v53 = vpack.c.bf16 %v400_v50, %v381_v49 }
  0xc5   : > { %v399_v54 = vsel %vm398_vm5, %v393_v51, %v1017_v46  ;;  %v380_v55 = vsel %vm379_vm6, %v374_v52, %v1012_v48 }
  0xc6   : > { %v907_v56 = vpack.c.bf16 %v399_v54, %v380_v55  ;;  %906 = vmatprep.subr.bf16.mxu0 %v905_v53 }
  0xc8   : > { %v416_v57 = vpop.permute.xlu1 %415  ;;  %v414_v58 = vpop.permute.xlu0 %413  ;;  %908 = vmatpush1.bf16.msra.mxu0 %v907_v56 }
  0xc9   : > { %v419_v59 = vsel %vm417_vm7, %v414_v58, %v416_v57 }
  0xca   : > { %469 = vmatprep.subr.mxu0 %v419_v59 }
  0xcc   : > { %v412_v60 = vpop.permute.xlu0 %411 }
  0xcd   : > { %v418_v62 = vsel %vm417_vm7, %v412_v60, %v414_v58 }
  0xce   : > { %470 = vmatpush1.msra.mxu0 %v418_v62 }
  0xcf   : > { %885 = vmatmul.mubr.msk.f32.vlgmr.msra.gmra.mrb[0].mxu0 %vm449_vm8, %v424_v61 }
  0xd9   : > { %v447_v2 = vpop.permute.xlu1 %446 }
 0x1a2   : > { %v519_v5 = vpop.f32.mrb[0].mxu0 }
 0x1a3   : > { %v520_v6 = vadd.f32 %v519_v5, %v447_v2  ;;  %v521_v8 = vpop.f32.mrb[1].mxu0 }
 0x1a4   : > { %v522_v11 = vadd.f32 %v521_v8, %v447_v2 }
 0x1a5   : > { %v524_v9 = vmax.f32 %v520_v6, 0.0 }
 0x1a6   : > { %v525_v13 = vmax.f32 %v522_v11, 0.0 }
 0x1a7   : > { %v538_v10 = vmul.f32 %v531_v7, %v524_v9  ;;  %v691_v9 = vld [vmem:[%s1447_s3] sm:$0xff] }
 0x1a8   : > { %v539_v15 = vmul.f32 %v535_v14, %v525_v13 }
 0x1a9   : > { %571 = vrot.lane.b32.xlu0 %v538_v10, %s1155_s15  ;;  %553 = vrot.lane.b32.xlu1 %v538_v10, %s1156_s16 }
 0x1aa   : > { %v1020_v16 = vpack.i.bf16 %v1162_v4, %v539_v15 }
 0x1ad   : > { %607 = vrot.lane.b32.xlu0 %v538_v10, %s1159_s19  ;;  %589 = vrot.lane.b32.xlu1 %v538_v10, %s1157_s18 }
 0x1b1   : > { %643 = vrot.lane.b32.xlu0 %v538_v10, %s1161_s13  ;;  %625 = vrot.lane.b32.xlu1 %v538_v10, %s1158_s7 }
 0x1b5   : > { %1021 = vrot.lane.b32.xlu0 %v1020_v16, %s1156_s16  ;;  %1031 = vrot.lane.b32.xlu1 %v1020_v16, %s1157_s18 }
 0x1b9   : > { %1026 = vrot.lane.b32.xlu0 %v1020_v16, %s1155_s15  ;;  %1041 = vrot.lane.b32.xlu1 %v1020_v16, %s1158_s7  ;;  %s884_s7 = sshll.u32 %s1300_s20, 4 }
 0x1bd   : > { %1036 = vrot.lane.b32.xlu0 %v1020_v16, %s1159_s19  ;;  %1051 = vrot.lane.b32.xlu1 %v1020_v16, %s1160_s11  ;;  %s892_s19 = sshll.u32 %s1222_s25, 8  ;;  %s1165_s25 = smov [#allocation8]  }
 0x1be   : > { %s1400_s17 = scalar_lea.hbm %s1450_s6, %s892_s19  ;;  %s1090_s29 = sshll.u32 %s1165_s25, 4  ;;  %s1091_s29 = int_to_ptr.vmem [resolvable:$false] %s1090_s29 }
 0x1bf   : > { %s1092_s16 = scalar_lea.vmem %s1091_s29, 512 }
 0x1c1   : > { %1046 = vrot.lane.b32.xlu0 %v1020_v16, %s1161_s13  ;;  %661 = vrot.lane.b32.xlu1 %v538_v10, %s1160_s11  ;;  %s267_s11 = scalar_lea.vmem [#allocation8], %s884_s7 }
 0x1c2   : > { %s809_s13 = sshll.u32 %s267_s11, 4  ;;  %s1402_s13 = int_to_ptr.vmem [resolvable:$true] %s809_s13 }
 0x1c3   : > { %s1086_s28 = scalar_lea.vmem %s1402_s13, 256  ;;  %p1093_p5 = scmp.lt.s32.totalorder %s1402_s13, %s1091_s29 }
 0x1c4   : > { %p1087_p6 = scmp.ne.s32.totalorder %s1402_s13, %s1086_s28  ;;  %p1094_p10 = scmp.lt.s32.totalorder %s1092_s16, %s1086_s28 }
 0x1c5   : > { %681 = vrot.lane.b32.xlu0 %v539_v15, %s1164_s10  ;;  %683 = vrot.lane.b32.xlu1 %v1162_v4, %s1164_s10 }
 0x1c6   : > { %p1088_p12 = pnand %p1087_p6, %p1458_p11  ;;  %p1095_p2 = por %p1094_p10, %p1093_p5 }
 0x1c8   : > { %p1089_p13 = pneg %p1088_p12 }
 0x1c9   : > { %679 = vrot.lane.b32.xlu0 %v538_v10, %s1164_s10  ;;  %713 = vperm.xlu1 %1019, %v710_v17  }
 0x1ca   : > { %p1096_p4 = pnand %p1095_p2, %p1089_p13 }
 0x21b   : > { %v572_v18 = vpop.permute.xlu0 %571  ;;  %v554_v19 = vpop.permute.xlu1 %553 }
 0x21f   : > { %v608_v20 = vpop.permute.xlu0 %607  ;;  %v590_v21 = vpop.permute.xlu1 %589 }
 0x223   : > { %v644_v22 = vpop.permute.xlu0 %643  ;;  %v626_v23 = vpop.permute.xlu1 %625 }
 0x227   : > { %v1022_v24 = vpop.permute.xlu0 %1021  ;;  %v1032_v25 = vpop.permute.xlu1 %1031 }
 0x228   : > { %v1024_v26 = vunpack.i.h.bf16 %v1022_v24  ;;  %v1023_v27 = vunpack.i.l.bf16 %v1022_v24  ;;  %v1034_v28 = vunpack.i.h.bf16 %v1032_v25  ;;  %v1033_v29 = vunpack.i.l.bf16 %v1032_v25 }
 0x22a   : > { %v560_v4 = vsel %vm284_vm0, %v1023_v27, %v1024_v26  ;;  %v559_v30 = vsel %vm284_vm0, %v554_v19, %v1023_v27  ;;  %v596_v40 = vsel %vm322_vm1, %v1033_v29, %v1034_v28  ;;  %v595_v42 = vsel %vm322_vm1, %v590_v21, %v1033_v29 }
 0x22b   : > { %v1027_v31 = vpop.permute.xlu0 %1026  ;;  %v1042_v32 = vpop.permute.xlu1 %1041  ;;  %v909_v33 = vpack.c.bf16 %v560_v4, %v539_v15  ;;  %v911_v34 = vpack.c.bf16 %v559_v30, %v538_v10 }
 0x22c   : > { %v1029_v35 = vunpack.i.h.bf16 %v1027_v31  ;;  %v1028_v36 = vunpack.i.l.bf16 %v1027_v31  ;;  %v1044_v37 = vunpack.i.h.bf16 %v1042_v32  ;;  %v1043_v38 = vunpack.i.l.bf16 %v1042_v32 }
 0x22d   : > { %910 = vmatprep.subr.bf16.mxu1 %v909_v33 }
 0x22e   : > { %912 = vmatpush1.bf16.msra.mxu1 %v911_v34  ;;  %v578_v39 = vsel %vm303_vm2, %v1028_v36, %v1029_v35  ;;  %v577_v41 = vsel %vm303_vm2, %v572_v18, %v1028_v36  ;;  %v632_v49 = vsel %vm360_vm3, %v1043_v38, %v1044_v37  ;;  %v631_v50 = vsel %vm360_vm3, %v626_v23, %v1043_v38 }
 0x22f   : > { %v1037_v43 = vpop.permute.xlu0 %1036  ;;  %v1052_v44 = vpop.permute.xlu1 %1051  ;;  %v913_v45 = vpack.c.bf16 %v596_v40, %v578_v39  ;;  %v915_v46 = vpack.c.bf16 %v595_v42, %v577_v41 }
 0x230   : > { %v1039_v47 = vunpack.i.h.bf16 %v1037_v43  ;;  %v1038_v48 = vunpack.i.l.bf16 %v1037_v43  ;;  %v1054_v51 = vunpack.i.h.bf16 %v1052_v44  ;;  %v1053_v52 = vunpack.i.l.bf16 %v1052_v44 }
 0x231   : > { %914 = vmatprep.subr.bf16.mxu1 %v913_v45 }
 0x232   : > { %916 = vmatpush1.bf16.msra.mxu1 %v915_v46  ;;  %v614_v53 = vsel %vm341_vm4, %v1038_v48, %v1039_v47  ;;  %v613_v54 = vsel %vm341_vm4, %v608_v20, %v1038_v48  ;;  %v668_v0 = vsel %vm398_vm5, %v1053_v52, %v1054_v51 }
 0x233   : > { %v1047_v55 = vpop.permute.xlu0 %1046  ;;  %v662_v56 = vpop.permute.xlu1 %661  ;;  %v917_v57 = vpack.c.bf16 %v632_v49, %v614_v53  ;;  %v919_v58 = vpack.c.bf16 %v631_v50, %v613_v54 }
 0x234   : > { %v1049_v59 = vunpack.i.h.bf16 %v1047_v55  ;;  %v1048_v60 = vunpack.i.l.bf16 %v1047_v55  ;;  %v667_v62 = vsel %vm398_vm5, %v662_v56, %v1053_v52 }
 0x235   : > { %918 = vmatprep.subr.bf16.mxu1 %v917_v57 }
 0x236   : > { %v649_v61 = vsel %vm379_vm6, %v644_v22, %v1048_v60  ;;  %920 = vmatpush1.bf16.msra.mxu1 %v919_v58  ;;  %v650_v63 = vsel %vm379_vm6, %v1048_v60, %v1049_v59 }
 0x237   : > { %v923_v1 = vpack.c.bf16 %v667_v62, %v649_v61  ;;  %v682_v2 = vpop.permute.xlu0 %681  ;;  %v684_v3 = vpop.permute.xlu1 %683  ;;  %v921_v5 = vpack.c.bf16 %v668_v0, %v650_v63 }
 0x238   : > { %v686_v6 = vsel %vm417_vm7, %v682_v2, %v684_v3 }
 0x239   : > { %922 = vmatprep.subr.bf16.mxu1 %v921_v5 }
 0x23a   : > { %924 = vmatpush1.bf16.msra.mxu1 %v923_v1 }
 0x23b   : > { %v680_v7 = vpop.permute.xlu0 %679  ;;  %735 = vmatprep.subr.mxu1 %v686_v6 }
 0x23c   : > { %v685_v8 = vsel %vm417_vm7, %v680_v7, %v682_v2 }
 0x23e   : > { %736 = vmatpush1.msra.mxu1 %v685_v8 }
 0x23f   : > { %886 = vmatmul.mubr.msk.f32.vlgmr.msra.gmra.mrb[0].mxu1 %vm449_vm8, %v691_v9 }
 0x248   : > { %v714_v10 = vpop.permute.xlu1 %713 }
 0x312   : > { %v785_v11 = vpop.f32.mrb[0].mxu1 }
 0x313   : > { %v786_v12 = vadd.f32 %v785_v11, %v714_v10  ;;  %v787_v13 = vpop.f32.mrb[1].mxu1 }
 0x314   : > { %v788_v14 = vadd.f32 %v787_v13, %v714_v10 }
 0x315   : > { %v790_v15 = vmax.f32 %v786_v12, 0.0 }
 0x316   : > { %v791_v16 = vmax.f32 %v788_v14, 0.0 }
 0x317   : > { %792 = vst [vmem:[%s267_s11] sm:$0xff] %v790_v15 }
 0x318   : > { %793 = vst [vmem:[%s267_s11 + $0x8] sm:$0xff] %v791_v16 }
 0x319   : > { %1099 = shalt.err (!%p1096_p4)
}
 0x31a   : > { %s1100_s20 = scalar_lea.hbm %s1400_s17, 256  ;;  %s1104_s18 = scalar_lea.hbm %s1450_s6, 512 }
 0x31b   : > { %p1101_p7 = scmp.ne.s32.totalorder %s1400_s17, %s1100_s20  ;;  %p1105_p0 = scmp.lt.u32.totalorder %s1400_s17, %s1450_s6 }
 0x31c   : > { %p1106_p1 = scmp.lt.u32.totalorder %s1104_s18, %s1100_s20  ;;  %p1108_p6 = scmp.lt.u32.totalorder %s1100_s20, %s1400_s17 }
 0x31d   : > { %p1102_p8 = pnand %p1101_p7, %p1458_p11 }
 0x31e   : > { %p1107_p3 = por %p1106_p1, %p1105_p0 }
 0x31f   : > { %p1103_p9 = pneg %p1102_p8 }
 0x320   : > { %p1109_p12 = por %p1108_p6, %p1107_p3 }
 0x322   : > { %p1110_p13 = pnand %p1109_p12, %p1103_p9 }
 0x324   : > { %1113 = shalt.err (!%p1110_p13)
}
 0x325   : > { %930 = dma.vmem_to_hbm [thread:$0]  (%p1458_p11), %s1402_s13, 256, %s1400_s17, %s795_s26  }
 0x326 PF: > { %s821_s11 = sand.u32 1, %s1140_s21   ;;  %p1459_p5 = scmp.ne.s32.totalorder %s1454_s9, 0 }
 0x327   : > { %p1460_p10 = scmp.ge.s32.totalorder %s1152_s24, 2  ;;  %s822_s10 = scalar_lea.sflag [#allocation7], %s821_s11 }
 0x329   : > { %p937_p2 = pnand %p1460_p10, %p1459_p5 }
 0x32b   : > { %1135 = dma.done.wait (!%p937_p2), %s822_s10, 256  }
 0x32c   : > { %1137 = vsyncadd (!%p937_p2), %s822_s10, 4294967040  ;;  %p19_p4 = scmp.ge.s32.totalorder %s1226_s27, 4   ;;  %s1461_s21 = smov %s1144_s22 }
 0x32d   : > { %s1462_s22 = smov %s1148_s23  ;;  %s1463_s23 = smov %s1238_s30 }
 0x32e   : > { %s1464_s24 = smov %s1226_s27  ;;  %21 = sbr.rel (!%p19_p4) target bundleno = 5 (0x5), region = 89 }
 0x335   :  { %827 = vsyncpa [#allocation6], 1 }
 0x336   :  { %829 = vsyncpa [#allocation6 + $0x1], 1 }
 0x337   :  { %830 = vsyncpa [#allocation7], 1 }
 0x338   :  { %832 = vsyncpa [#allocation7 + $0x1], 1 }

// kernel: tpu_custom_call.1
= control target key start
LH: loop header
LB: loop body
LE: loop exit
PB: predicated region body
PF: predicated region fallthrough
CT: control target
= control target key end

     0   :  { %11 = vsyncpa [#allocation6], 0  ;;  %s1444_s0 = inlined_call_operand.hbm [shape: f32[2,8,384], index: 0, kind: input, shape index: {}]   ;;  %s1445_s1 = inlined_call_operand.vmem [shape: f32[8,72], index: 1, kind: input, shape index: {}]   ;;  %s1446_s2 = inlined_call_operand.vmem [shape: f32[8,1], index: 2, kind: input, shape index: {}]   ;;  %s1447_s3 = inlined_call_operand.vmem [shape: f32[8,72], index: 3, kind: input, shape index: {}]   ;;  %s1448_s4 = inlined_call_operand.vmem [shape: f32[8,1], index: 4, kind: input, shape index: {}]   ;;  %s1449_s5 = inlined_call_operand.vmem [shape: f32[1,256], index: 5, kind: input, shape index: {}]   ;;  %s1450_s6 = inlined_call_operand.hbm [shape: f32[2,8,256], index: 6, kind: output, shape index: {}]  }
   0x1   :  { %13 = vsyncpa [#allocation6 + $0x1], 0 }
   0x2   :  { %14 = vsyncpa [#allocation7], 0 }
   0x3   :  { %16 = vsyncpa [#allocation7 + $0x1], 0  ;;  %s1201_s21 = smov 0   ;;  %s1203_s22 = smov 0  }
   0x4   :  { %s1205_s23 = smov 0   ;;  %s1207_s24 = smov 0  }
   0x5 LB: > { %s1222_s25 = sadd.s32 4294967295, %s1152_s24   ;;  %s879_s26 = sadd.s32 4294967294, %s1152_s24   ;;  %s1152_s24 = sphi %s1207_s24, %s1464_s24   ;;  %s1148_s23 = sphi %s1205_s23, %s1463_s23   ;;  %s1144_s22 = sphi %s1203_s22, %s1462_s22   ;;  %s1140_s21 = sphi %s1201_s21, %s1461_s21  }
   0x6   : > { %s1226_s27 = sadd.s32 1, %s1152_s24   ;;  %s29_s28 = sadd.s32 1, %s1148_s23 }
   0x7   : > { %s26_s29 = ssub.s32 %s1152_s24, %s1226_s27  ;;  %p36_p0 = scmp.ne.s32.totalorder %s1148_s23, %s1144_s22 }
   0x8   : > { %p27_p1 = scmp.eq.s32.totalorder %s26_s29, 0  ;;  %p37_p2 = scmp.eq.s32.totalorder %s1152_s24, 0 }
   0x9   : > { %p42_p3 = scmp.ne.s32.totalorder %s1144_s22, %s1140_s21  ;;  %p43_p4 = scmp.eq.s32.totalorder %s1222_s25, 0 }
   0xa   : > { %s1238_s30 = scalar_select %p27_p1, %s1148_s23, %s29_s28  }
   0xb   : > { %p38_p5 = por %p37_p2, %p36_p0  ;;  %p1240_p6 = por %p43_p4, %p42_p3 }
   0xc   : > { %p171_p7 = scmp.eq.s32.totalorder %s1222_s25, 1  ;;  %p177_p8 = scmp.eq.s32.totalorder %s879_s26, 1 }
   0xd   : > { %p940_p10 = scmp.lt.s32.totalorder %s1152_s24, 2  ;;  %s212_s10 = sand.u32 1, %s1148_s23  }
   0xe   : > { %p1247_p11 = por %p171_p7, %p36_p0  ;;  %p1251_p12 = por %p177_p8, %p42_p3 }
   0xf   : > { %s926_s11 = smul.u32 384, %s1152_s24  ;;  %p1262_p13 = pnand %p940_p10, %p38_p5 }
  0x10   : > { %s1453_s8 = scalar_select %p1247_p11, 1, 0 }
  0x11   : > { %s1454_s9 = scalar_select %p1251_p12, 1, 0 }
  0x12   : > { %s925_s12 = smul.u32 24, %s212_s10  ;;  %s1260_s15 = scalar_lea.hbm %s1444_s0, %s926_s11 }
  0x13   : > { %s213_s19 = scalar_lea.sflag [#allocation6], %s212_s10  ;;  %s1056_s20 = scalar_lea.hbm %s1260_s15, 384 }
  0x14   : > { %s216_s17 = scalar_lea.vmem [#allocation5], %s925_s12  ;;  %p1057_p2 = scmp.ne.s32.totalorder %s1260_s15, %s1056_s20 }
  0x15   : > { %s224_s18 = sshll.u32 %s216_s17, 4  ;;  %p1058_p3 = pneg %p1262_p13  ;;  %s1267_s18 = int_to_ptr.vmem [resolvable:$true] %s224_s18 }
  0x16   : > { %s1061_s29 = scalar_lea.hbm %s1444_s0, 768  ;;  %p1062_p7 = scmp.lt.u32.totalorder %s1260_s15, %s1444_s0 }
  0x17   : > { %p1059_p4 = pnand %p1058_p3, %p1057_p2  ;;  %p1063_p8 = scmp.lt.u32.totalorder %s1061_s29, %s1056_s20 }
  0x18   : > { %p1065_p9 = scmp.lt.u32.totalorder %s1056_s20, %s1260_s15 }
  0x19   : > { %p1060_p5 = pneg %p1059_p4  ;;  %p1064_p10 = por %p1063_p8, %p1062_p7 }
  0x1b   : > { %p1066_p0 = por %p1065_p9, %p1064_p10 }
  0x1d   : > { %p1067_p1 = pnand %p1066_p0, %p1060_p5 }
  0x1f   : > { %1070 = shalt.err (!%p1067_p1)
}
  0x20   : > { %s1071_s10 = scalar_lea.vmem %s1267_s18, 384  ;;  %s1154_s12 = smov [#allocation5]  }
  0x21   : > { %p1072_p2 = scmp.ne.s32.totalorder %s1267_s18, %s1071_s10  ;;  %s1076_s14 = sshll.u32 %s1154_s12, 4  ;;  %s1077_s14 = int_to_ptr.vmem [resolvable:$false] %s1076_s14 }
  0x22   : > { %s1078_s17 = scalar_lea.vmem %s1077_s14, 768  ;;  %p1079_p11 = scmp.lt.s32.totalorder %s1267_s18, %s1077_s14 }
  0x23   : > { %p1074_p4 = pnand %p1072_p2, %p1058_p3  ;;  %p1080_p7 = scmp.lt.s32.totalorder %s1078_s17, %s1071_s10 }
  0x25   : > { %p1075_p12 = pneg %p1074_p4  ;;  %p1081_p8 = por %p1080_p7, %p1079_p11 }
  0x27   : > { %p1082_p9 = pnand %p1081_p8, %p1075_p12 }
  0x29   : > { %1085 = shalt.err (!%p1082_p9)
}
  0x2a   : > { %935 = dma.hbm_to_vmem [thread:$0]  (!%p1262_p13), %s1260_s15, 384, %s1267_s18, %s213_s19  }
  0x2b   : > { %p1456_p0 = scmp.lt.s32.totalorder %s1152_s24, 3  ;;  %p1457_p1 = scmp.ge.s32.totalorder %s1152_s24, 1 }
  0x2d   : > { %p230_p3 = pnand %p1457_p1, %p1456_p0 }
  0x2e   : > { %s1300_s20 = sand.u32 (!%p230_p3), 1, %s1144_s22  }
  0x2f   : > { %233 = sbr.rel (%p230_p3) target bundleno = 806 (0x326), region = 44  ;;  %s236_s28 = scalar_lea.sflag (!%p230_p3), [#allocation6], %s1300_s20 }
  0x30   : > { %s927_s26 = smul.u32 (!%p230_p3), 24, %s1300_s20 }
  0x32   : > { %s239_s29 = scalar_lea.vmem (!%p230_p3), [#allocation5], %s927_s26 }
  0x36   : > { %1131 = dma.done.wait (%p1240_p6), %s236_s28, 384  }
  0x37   : > { %1133 = vsyncadd (%p1240_p6), %s236_s28, 4294966912  ;;  %v292_v0 = vld [vmem:[%s239_s29 + $0x8] sm:$0xff]  ;;  %v293_v1 = vld [vmem:[%s239_s29 + $0x10] sm:$0xff]  ;;  %s1155_s15 = smov 126   ;;  %s1156_s16 = smov 127   ;;  %v1162_v4 = vmov 0.0   ;;  %v528_v63 = vlaneseq }
  0x38   : > { %v989_v2 = vpack.i.bf16 %v293_v1, %v292_v0  ;;  %v272_v3 = vld [vmem:[%s239_s29] sm:$0xff]  ;;  %s1157_s18 = smov 112   ;;  %s1158_s7 = smov 110   ;;  %517 = vmatprep.mubr.f32.mxu0 %v1162_v4  ;;  %783 = vmatprep.mubr.f32.mxu1 %v1162_v4  ;;  %v1163_v5 = vmov 0   ;;  %vm284_vm0 = vcmask 1039360   ;;  %vm322_vm1 = vcmask 916480  }
  0x39   : > { %s1159_s19 = smov 111   ;;  %s1160_s11 = smov 95   ;;  %1019 = vset.pattern.permute.xlu1 %v1163_v5  ;;  %1055 = vset.pattern.permute.xlu0 %v1163_v5  ;;  %v443_v6 = vld [vmem:[%s1446_s2] sm:$0xff]  ;;  %vm303_vm2 = vcmask 1031168   ;;  %vm360_vm3 = vcmask 900096   ;;  %vm341_vm4 = vcmask 908288  }
  0x3a   : > { %990 = vrot.lane.b32.xlu1 %v989_v2, %s1155_s15  ;;  %985 = vrot.lane.b32.xlu0 %v989_v2, %s1156_s16  ;;  %s1161_s13 = smov 96   ;;  %s1164_s10 = smov 94   ;;  %vm398_vm5 = vcmask 777216   ;;  %vm379_vm6 = vcmask 785408   ;;  %vm417_vm7 = vcmask 769024   ;;  %v424_v61 = vld [vmem:[%s1445_s1] sm:$0xff] }
  0x3b   : > { %vm449_vm8 = vcmask 588800   ;;  %s795_s26 = scalar_lea.sflag [#allocation7], %s1300_s20  ;;  %p1458_p11 = scmp.ne.s32.totalorder %s1453_s8, 0 }
  0x3e   : > { %995 = vrot.lane.b32.xlu1 %v989_v2, %s1157_s18  ;;  %278 = vrot.lane.b32.xlu0 %v272_v3, %s1156_s16 }
  0x42   : > { %316 = vrot.lane.b32.xlu1 %v272_v3, %s1157_s18  ;;  %297 = vrot.lane.b32.xlu0 %v272_v3, %s1155_s15 }
  0x46   : > { %1005 = vrot.lane.b32.xlu1 %v989_v2, %s1158_s7  ;;  %1000 = vrot.lane.b32.xlu0 %v989_v2, %s1159_s19 }
  0x4a   : > { %354 = vrot.lane.b32.xlu1 %v272_v3, %s1158_s7  ;;  %335 = vrot.lane.b32.xlu0 %v272_v3, %s1159_s19 }
  0x4e   : > { %1015 = vrot.lane.b32.xlu1 %v989_v2, %s1160_s11  ;;  %1010 = vrot.lane.b32.xlu0 %v989_v2, %s1161_s13 }
  0x52   : > { %392 = vrot.lane.b32.xlu1 %v272_v3, %s1160_s11  ;;  %373 = vrot.lane.b32.xlu0 %v272_v3, %s1161_s13 }
  0x56   : > { %415 = vrot.lane.b32.xlu1 %v293_v1, %s1164_s10  ;;  %413 = vrot.lane.b32.xlu0 %v292_v0, %s1164_s10 }
  0x5a   : > { %411 = vrot.lane.b32.xlu0 %v272_v3, %s1164_s10  ;;  %446 = vperm.xlu1 %1019, %v443_v6  }
  0xac   : > { %v991_v7 = vpop.permute.xlu1 %990  ;;  %v986_v8 = vpop.permute.xlu0 %985 }
  0xad   : > { %v988_v9 = vunpack.i.h.bf16 %v986_v8  ;;  %v987_v10 = vunpack.i.l.bf16 %v986_v8  ;;  %v993_v11 = vunpack.i.h.bf16 %v991_v7  ;;  %v992_v12 = vunpack.i.l.bf16 %v991_v7 }
  0xaf   : > { %v286_v13 = vsel %vm284_vm0, %v987_v10, %v988_v9  ;;  %v305_v21 = vsel %vm303_vm2, %v992_v12, %v993_v11 }
  0xb0   : > { %v996_v14 = vpop.permute.xlu1 %995  ;;  %v279_v15 = vpop.permute.xlu0 %278  ;;  %v893_v16 = vpack.c.bf16 %v286_v13, %v292_v0  ;;  %v529_v0 = vshrl.u32 %v528_v63, 7 }
  0xb1   : > { %v998_v17 = vunpack.i.h.bf16 %v996_v14  ;;  %v997_v18 = vunpack.i.l.bf16 %v996_v14  ;;  %v285_v19 = vsel %vm284_vm0, %v279_v15, %v987_v10 }
  0xb2   : > { %894 = vmatprep.subr.bf16.mxu0 %v893_v16  ;;  %v895_v20 = vpack.c.bf16 %v285_v19, %v272_v3  ;;  %v530_v1 = vsub.s32 0, %v529_v0  ;;  %v526_v3 = vld [vmem:[%s1449_s5] sm:$0x3] }
  0xb3   : > { %v324_v22 = vsel %vm322_vm1, %v997_v18, %v998_v17  ;;  %v710_v17 = vld [vmem:[%s1448_s4] sm:$0xff] }
  0xb4   : > { %v317_v23 = vpop.permute.xlu1 %316  ;;  %v298_v24 = vpop.permute.xlu0 %297  ;;  %896 = vmatpush1.bf16.msra.mxu0 %v895_v20  ;;  %v897_v25 = vpack.c.bf16 %v324_v22, %v305_v21  ;;  %v531_v7 = vrot.slane %v526_v3, %v530_v1 }
  0xb5   : > { %v323_v26 = vsel %vm322_vm1, %v317_v23, %v997_v18  ;;  %v304_v27 = vsel %vm303_vm2, %v298_v24, %v992_v12  ;;  %v534_v12 = vsub.s32 1, %v529_v0 }
  0xb6   : > { %v899_v28 = vpack.c.bf16 %v323_v26, %v304_v27  ;;  %898 = vmatprep.subr.bf16.mxu0 %v897_v25 }
  0xb7   : > { %v535_v14 = vrot.slane %v526_v3, %v534_v12 }
  0xb8   : > { %v1006_v29 = vpop.permute.xlu1 %1005  ;;  %v1001_v30 = vpop.permute.xlu0 %1000  ;;  %900 = vmatpush1.bf16.msra.mxu0 %v899_v28 }
  0xb9   : > { %v1008_v31 = vunpack.i.h.bf16 %v1006_v29  ;;  %v1007_v32 = vunpack.i.l.bf16 %v1006_v29  ;;  %v1003_v33 = vunpack.i.h.bf16 %v1001_v30  ;;  %v1002_v34 = vunpack.i.l.bf16 %v1001_v30 }
  0xbb   : > { %v343_v35 = vsel %vm341_vm4, %v1002_v34, %v1003_v33  ;;  %v362_v36 = vsel %vm360_vm3, %v1007_v32, %v1008_v31 }
  0xbc   : > { %v355_v37 = vpop.permute.xlu1 %354  ;;  %v336_v38 = vpop.permute.xlu0 %335  ;;  %v901_v39 = vpack.c.bf16 %v362_v36, %v343_v35 }
  0xbd   : > { %v361_v40 = vsel %vm360_vm3, %v355_v37, %v1007_v32  ;;  %v342_v41 = vsel %vm341_vm4, %v336_v38, %v1002_v34 }
  0xbe   : > { %v903_v42 = vpack.c.bf16 %v361_v40, %v342_v41  ;;  %902 = vmatprep.subr.bf16.mxu0 %v901_v39 }
  0xc0   : > { %v1016_v43 = vpop.permute.xlu1 %1015  ;;  %v1011_v44 = vpop.permute.xlu0 %1010  ;;  %904 = vmatpush1.bf16.msra.mxu0 %v903_v42 }
  0xc1   : > { %v1018_v45 = vunpack.i.h.bf16 %v1016_v43  ;;  %v1017_v46 = vunpack.i.l.bf16 %v1016_v43  ;;  %v1013_v47 = vunpack.i.h.bf16 %v1011_v44  ;;  %v1012_v48 = vunpack.i.l.bf16 %v1011_v44 }
  0xc3   : > { %v381_v49 = vsel %vm379_vm6, %v1012_v48, %v1013_v47  ;;  %v400_v50 = vsel %vm398_vm5, %v1017_v46, %v1018_v45 }
  0xc4   : > { %v393_v51 = vpop.permute.xlu1 %392  ;;  %v374_v52 = vpop.permute.xlu0 %373  ;;  %v905_v53 = vpack.c.bf16 %v400_v50, %v381_v49 }
  0xc5   : > { %v399_v54 = vsel %vm398_vm5, %v393_v51, %v1017_v46  ;;  %v380_v55 = vsel %vm379_vm6, %v374_v52, %v1012_v48 }
  0xc6   : > { %v907_v56 = vpack.c.bf16 %v399_v54, %v380_v55  ;;  %906 = vmatprep.subr.bf16.mxu0 %v905_v53 }
  0xc8   : > { %v416_v57 = vpop.permute.xlu1 %415  ;;  %v414_v58 = vpop.permute.xlu0 %413  ;;  %908 = vmatpush1.bf16.msra.mxu0 %v907_v56 }
  0xc9   : > { %v419_v59 = vsel %vm417_vm7, %v414_v58, %v416_v57 }
  0xca   : > { %469 = vmatprep.subr.mxu0 %v419_v59 }
  0xcc   : > { %v412_v60 = vpop.permute.xlu0 %411 }
  0xcd   : > { %v418_v62 = vsel %vm417_vm7, %v412_v60, %v414_v58 }
  0xce   : > { %470 = vmatpush1.msra.mxu0 %v418_v62 }
  0xcf   : > { %885 = vmatmul.mubr.msk.f32.vlgmr.msra.gmra.mrb[0].mxu0 %vm449_vm8, %v424_v61 }
  0xd9   : > { %v447_v2 = vpop.permute.xlu1 %446 }
 0x1a2   : > { %v519_v5 = vpop.f32.mrb[0].mxu0 }
 0x1a3   : > { %v520_v6 = vadd.f32 %v519_v5, %v447_v2  ;;  %v521_v8 = vpop.f32.mrb[1].mxu0 }
 0x1a4   : > { %v522_v11 = vadd.f32 %v521_v8, %v447_v2 }
 0x1a5   : > { %v524_v9 = vmax.f32 %v520_v6, 0.0 }
 0x1a6   : > { %v525_v13 = vmax.f32 %v522_v11, 0.0 }
 0x1a7   : > { %v538_v10 = vmul.f32 %v531_v7, %v524_v9  ;;  %v691_v9 = vld [vmem:[%s1447_s3] sm:$0xff] }
 0x1a8   : > { %v539_v15 = vmul.f32 %v535_v14, %v525_v13 }
 0x1a9   : > { %571 = vrot.lane.b32.xlu0 %v538_v10, %s1155_s15  ;;  %553 = vrot.lane.b32.xlu1 %v538_v10, %s1156_s16 }
 0x1aa   : > { %v1020_v16 = vpack.i.bf16 %v1162_v4, %v539_v15 }
 0x1ad   : > { %607 = vrot.lane.b32.xlu0 %v538_v10, %s1159_s19  ;;  %589 = vrot.lane.b32.xlu1 %v538_v10, %s1157_s18 }
 0x1b1   : > { %643 = vrot.lane.b32.xlu0 %v538_v10, %s1161_s13  ;;  %625 = vrot.lane.b32.xlu1 %v538_v10, %s1158_s7 }
 0x1b5   : > { %1021 = vrot.lane.b32.xlu0 %v1020_v16, %s1156_s16  ;;  %1031 = vrot.lane.b32.xlu1 %v1020_v16, %s1157_s18 }
 0x1b9   : > { %1026 = vrot.lane.b32.xlu0 %v1020_v16, %s1155_s15  ;;  %1041 = vrot.lane.b32.xlu1 %v1020_v16, %s1158_s7  ;;  %s884_s7 = sshll.u32 %s1300_s20, 4 }
 0x1bd   : > { %1036 = vrot.lane.b32.xlu0 %v1020_v16, %s1159_s19  ;;  %1051 = vrot.lane.b32.xlu1 %v1020_v16, %s1160_s11  ;;  %s892_s19 = sshll.u32 %s1222_s25, 8  ;;  %s1165_s25 = smov [#allocation8]  }
 0x1be   : > { %s1400_s17 = scalar_lea.hbm %s1450_s6, %s892_s19  ;;  %s1090_s29 = sshll.u32 %s1165_s25, 4  ;;  %s1091_s29 = int_to_ptr.vmem [resolvable:$false] %s1090_s29 }
 0x1bf   : > { %s1092_s16 = scalar_lea.vmem %s1091_s29, 512 }
 0x1c1   : > { %1046 = vrot.lane.b32.xlu0 %v1020_v16, %s1161_s13  ;;  %661 = vrot.lane.b32.xlu1 %v538_v10, %s1160_s11  ;;  %s267_s11 = scalar_lea.vmem [#allocation8], %s884_s7 }
 0x1c2   : > { %s809_s13 = sshll.u32 %s267_s11, 4  ;;  %s1402_s13 = int_to_ptr.vmem [resolvable:$true] %s809_s13 }
 0x1c3   : > { %s1086_s28 = scalar_lea.vmem %s1402_s13, 256  ;;  %p1093_p5 = scmp.lt.s32.totalorder %s1402_s13, %s1091_s29 }
 0x1c4   : > { %p1087_p6 = scmp.ne.s32.totalorder %s1402_s13, %s1086_s28  ;;  %p1094_p10 = scmp.lt.s32.totalorder %s1092_s16, %s1086_s28 }
 0x1c5   : > { %681 = vrot.lane.b32.xlu0 %v539_v15, %s1164_s10  ;;  %683 = vrot.lane.b32.xlu1 %v1162_v4, %s1164_s10 }
 0x1c6   : > { %p1088_p12 = pnand %p1087_p6, %p1458_p11  ;;  %p1095_p2 = por %p1094_p10, %p1093_p5 }
 0x1c8   : > { %p1089_p13 = pneg %p1088_p12 }
 0x1c9   : > { %679 = vrot.lane.b32.xlu0 %v538_v10, %s1164_s10  ;;  %713 = vperm.xlu1 %1019, %v710_v17  }
 0x1ca   : > { %p1096_p4 = pnand %p1095_p2, %p1089_p13 }
 0x21b   : > { %v572_v18 = vpop.permute.xlu0 %571  ;;  %v554_v19 = vpop.permute.xlu1 %553 }
 0x21f   : > { %v608_v20 = vpop.permute.xlu0 %607  ;;  %v590_v21 = vpop.permute.xlu1 %589 }
 0x223   : > { %v644_v22 = vpop.permute.xlu0 %643  ;;  %v626_v23 = vpop.permute.xlu1 %625 }
 0x227   : > { %v1022_v24 = vpop.permute.xlu0 %1021  ;;  %v1032_v25 = vpop.permute.xlu1 %1031 }
 0x228   : > { %v1024_v26 = vunpack.i.h.bf16 %v1022_v24  ;;  %v1023_v27 = vunpack.i.l.bf16 %v1022_v24  ;;  %v1034_v28 = vunpack.i.h.bf16 %v1032_v25  ;;  %v1033_v29 = vunpack.i.l.bf16 %v1032_v25 }
 0x22a   : > { %v560_v4 = vsel %vm284_vm0, %v1023_v27, %v1024_v26  ;;  %v559_v30 = vsel %vm284_vm0, %v554_v19, %v1023_v27  ;;  %v596_v40 = vsel %vm322_vm1, %v1033_v29, %v1034_v28  ;;  %v595_v42 = vsel %vm322_vm1, %v590_v21, %v1033_v29 }
 0x22b   : > { %v1027_v31 = vpop.permute.xlu0 %1026  ;;  %v1042_v32 = vpop.permute.xlu1 %1041  ;;  %v909_v33 = vpack.c.bf16 %v560_v4, %v539_v15  ;;  %v911_v34 = vpack.c.bf16 %v559_v30, %v538_v10 }
 0x22c   : > { %v1029_v35 = vunpack.i.h.bf16 %v1027_v31  ;;  %v1028_v36 = vunpack.i.l.bf16 %v1027_v31  ;;  %v1044_v37 = vunpack.i.h.bf16 %v1042_v32  ;;  %v1043_v38 = vunpack.i.l.bf16 %v1042_v32 }
 0x22d   : > { %910 = vmatprep.subr.bf16.mxu1 %v909_v33 }
 0x22e   : > { %912 = vmatpush1.bf16.msra.mxu1 %v911_v34  ;;  %v578_v39 = vsel %vm303_vm2, %v1028_v36, %v1029_v35  ;;  %v577_v41 = vsel %vm303_vm2, %v572_v18, %v1028_v36  ;;  %v632_v49 = vsel %vm360_vm3, %v1043_v38, %v1044_v37  ;;  %v631_v50 = vsel %vm360_vm3, %v626_v23, %v1043_v38 }
 0x22f   : > { %v1037_v43 = vpop.permute.xlu0 %1036  ;;  %v1052_v44 = vpop.permute.xlu1 %1051  ;;  %v913_v45 = vpack.c.bf16 %v596_v40, %v578_v39  ;;  %v915_v46 = vpack.c.bf16 %v595_v42, %v577_v41 }
 0x230   : > { %v1039_v47 = vunpack.i.h.bf16 %v1037_v43  ;;  %v1038_v48 = vunpack.i.l.bf16 %v1037_v43  ;;  %v1054_v51 = vunpack.i.h.bf16 %v1052_v44  ;;  %v1053_v52 = vunpack.i.l.bf16 %v1052_v44 }
 0x231   : > { %914 = vmatprep.subr.bf16.mxu1 %v913_v45 }
 0x232   : > { %916 = vmatpush1.bf16.msra.mxu1 %v915_v46  ;;  %v614_v53 = vsel %vm341_vm4, %v1038_v48, %v1039_v47  ;;  %v613_v54 = vsel %vm341_vm4, %v608_v20, %v1038_v48  ;;  %v668_v0 = vsel %vm398_vm5, %v1053_v52, %v1054_v51 }
 0x233   : > { %v1047_v55 = vpop.permute.xlu0 %1046  ;;  %v662_v56 = vpop.permute.xlu1 %661  ;;  %v917_v57 = vpack.c.bf16 %v632_v49, %v614_v53  ;;  %v919_v58 = vpack.c.bf16 %v631_v50, %v613_v54 }
 0x234   : > { %v1049_v59 = vunpack.i.h.bf16 %v1047_v55  ;;  %v1048_v60 = vunpack.i.l.bf16 %v1047_v55  ;;  %v667_v62 = vsel %vm398_vm5, %v662_v56, %v1053_v52 }
 0x235   : > { %918 = vmatprep.subr.bf16.mxu1 %v917_v57 }
 0x236   : > { %v649_v61 = vsel %vm379_vm6, %v644_v22, %v1048_v60  ;;  %920 = vmatpush1.bf16.msra.mxu1 %v919_v58  ;;  %v650_v63 = vsel %vm379_vm6, %v1048_v60, %v1049_v59 }
 0x237   : > { %v923_v1 = vpack.c.bf16 %v667_v62, %v649_v61  ;;  %v682_v2 = vpop.permute.xlu0 %681  ;;  %v684_v3 = vpop.permute.xlu1 %683  ;;  %v921_v5 = vpack.c.bf16 %v668_v0, %v650_v63 }
 0x238   : > { %v686_v6 = vsel %vm417_vm7, %v682_v2, %v684_v3 }
 0x239   : > { %922 = vmatprep.subr.bf16.mxu1 %v921_v5 }
 0x23a   : > { %924 = vmatpush1.bf16.msra.mxu1 %v923_v1 }
 0x23b   : > { %v680_v7 = vpop.permute.xlu0 %679  ;;  %735 = vmatprep.subr.mxu1 %v686_v6 }
 0x23c   : > { %v685_v8 = vsel %vm417_vm7, %v680_v7, %v682_v2 }
 0x23e   : > { %736 = vmatpush1.msra.mxu1 %v685_v8 }
 0x23f   : > { %886 = vmatmul.mubr.msk.f32.vlgmr.msra.gmra.mrb[0].mxu1 %vm449_vm8, %v691_v9 }
 0x248   : > { %v714_v10 = vpop.permute.xlu1 %713 }
 0x312   : > { %v785_v11 = vpop.f32.mrb[0].mxu1 }
 0x313   : > { %v786_v12 = vadd.f32 %v785_v11, %v714_v10  ;;  %v787_v13 = vpop.f32.mrb[1].mxu1 }
 0x314   : > { %v788_v14 = vadd.f32 %v787_v13, %v714_v10 }
 0x315   : > { %v790_v15 = vmax.f32 %v786_v12, 0.0 }
 0x316   : > { %v791_v16 = vmax.f32 %v788_v14, 0.0 }
 0x317   : > { %792 = vst [vmem:[%s267_s11] sm:$0xff] %v790_v15 }
 0x318   : > { %793 = vst [vmem:[%s267_s11 + $0x8] sm:$0xff] %v791_v16 }
 0x319   : > { %1099 = shalt.err (!%p1096_p4)
}
 0x31a   : > { %s1100_s20 = scalar_lea.hbm %s1400_s17, 256  ;;  %s1104_s18 = scalar_lea.hbm %s1450_s6, 512 }
 0x31b   : > { %p1101_p7 = scmp.ne.s32.totalorder %s1400_s17, %s1100_s20  ;;  %p1105_p0 = scmp.lt.u32.totalorder %s1400_s17, %s1450_s6 }
 0x31c   : > { %p1106_p1 = scmp.lt.u32.totalorder %s1104_s18, %s1100_s20  ;;  %p1108_p6 = scmp.lt.u32.totalorder %s1100_s20, %s1400_s17 }
 0x31d   : > { %p1102_p8 = pnand %p1101_p7, %p1458_p11 }
 0x31e   : > { %p1107_p3 = por %p1106_p1, %p1105_p0 }
 0x31f   : > { %p1103_p9 = pneg %p1102_p8 }
 0x320   : > { %p1109_p12 = por %p1108_p6, %p1107_p3 }
 0x322   : > { %p1110_p13 = pnand %p1109_p12, %p1103_p9 }
 0x324   : > { %1113 = shalt.err (!%p1110_p13)
}
 0x325   : > { %930 = dma.vmem_to_hbm [thread:$0]  (%p1458_p11), %s1402_s13, 256, %s1400_s17, %s795_s26  }
 0x326 PF: > { %s821_s11 = sand.u32 1, %s1140_s21   ;;  %p1459_p5 = scmp.ne.s32.totalorder %s1454_s9, 0 }
 0x327   : > { %p1460_p10 = scmp.ge.s32.totalorder %s1152_s24, 2  ;;  %s822_s10 = scalar_lea.sflag [#allocation7], %s821_s11 }
 0x329   : > { %p937_p2 = pnand %p1460_p10, %p1459_p5 }
 0x32b   : > { %1135 = dma.done.wait (!%p937_p2), %s822_s10, 256  }
 0x32c   : > { %1137 = vsyncadd (!%p937_p2), %s822_s10, 4294967040  ;;  %p19_p4 = scmp.ge.s32.totalorder %s1226_s27, 4   ;;  %s1461_s21 = smov %s1144_s22 }
 0x32d   : > { %s1462_s22 = smov %s1148_s23  ;;  %s1463_s23 = smov %s1238_s30 }
 0x32e   : > { %s1464_s24 = smov %s1226_s27  ;;  %21 = sbr.rel (!%p19_p4) target bundleno = 5 (0x5), region = 89 }
 0x335   :  { %827 = vsyncpa [#allocation6], 1 }
 0x336   :  { %829 = vsyncpa [#allocation6 + $0x1], 1 }
 0x337   :  { %830 = vsyncpa [#allocation7], 1 }
 0x338   :  { %832 = vsyncpa [#allocation7 + $0x1], 1 }

</bundles_post_ra>
